<compile_context>
chip_gen: v7x
topology: tpu7x:2x2x1
jax: 0.10.0
libtpu: 0.0.40
codegen_flags: <defaults>
</compile_context>

<pallas_src>
import jax
import jax.numpy as jnp
from jax import lax
from jax.experimental import pallas as pl
from jax.experimental.pallas import tpu as pltpu

EPS = 1e-5


def _band3x3(w_hwio, W):
    """Fold the 3 kw taps and the width "SAME" zero-padding of a 3x3 HWIO conv
    into a K-stacked banded matrix acting on tap-stacked (rows, 3*W*Cin) slabs.

    Returns Wp of shape (3*W*Cin, W*Cout) with
      Wp[kh*W*Cin + (w+kw-1)*Cin + ci, w*Cout + co] = w[kh, kw, ci, co]
    (entries with w+kw-1 outside [0, W) dropped == zero padding in W)."""
    KH, KW, Ci, Co = w_hwio.shape
    blocks = []
    for kh in range(KH):
        m = sum(jnp.kron(jnp.eye(W, k=1 - kw, dtype=w_hwio.dtype), w_hwio[kh, kw])
                for kw in range(KW))
        blocks.append(m)
    return jnp.concatenate(blocks, axis=0)


def pack_params(params, W):
    """Per-parameter prep hoisted out of the hot path: banded/K-packed conv
    weights (bf16) and BN affine vectors tiled to the slab lane layout (f32).
    Call once at init and reuse across forward passes."""
    Cout = params["w1"].shape[-1]
    w1p = _band3x3(params["w1"].astype(jnp.float32), W).astype(jnp.bfloat16)
    w2p = _band3x3(params["w2"].astype(jnp.float32), W).astype(jnp.bfloat16)
    wsp = jnp.kron(jnp.eye(W, dtype=jnp.float32),
                   params["ws"].astype(jnp.float32)).astype(jnp.bfloat16)
    tile_vec = lambda v: jnp.tile(v.reshape(1, Cout).astype(jnp.float32), (1, W))
    return dict(w1p=w1p, w2p=w2p, wsp=wsp,
                g1=tile_vec(params["g1"]), b1=tile_vec(params["b1"]),
                g2=tile_vec(params["g2"]), b2=tile_vec(params["b2"]),
                gs=tile_vec(params["gs"]), bs=tile_vec(params["bs"]))


def basic_block(x_nchw, prep):
    """x_nchw: (N, Cin, H, W) float32. Returns (N, Cout, H, W) float32."""
    N, Cin, H, W = x_nchw.shape
    Cout = prep["g1"].shape[-1] // W
    R = N * H                    # slab rows
    Li, Lo = W * Cin, W * Cout   # slab lane widths (Lo = 128 at test shape)
    count = float(N * H * W)     # BN sample count per channel

    # NCHW -> NHWC -> lane-dense slab (N, H, W*Cin).
    x_slab = (jnp.transpose(x_nchw, (0, 2, 3, 1))
              .reshape(N, H, Li).astype(jnp.bfloat16))

    def bn(y, gamma, beta):
        # Train-mode BN.  Row-reduce FIRST (f32, VPU/XLU), then reduce-and-
        # broadcast across the W lane groups with log2(W) XLU lane rolls.
        s1 = jnp.sum(y, axis=0, keepdims=True)            # (1, Lo) f32
        s2 = jnp.sum(y * y, axis=0, keepdims=True)         # (1, Lo) f32
        if (W & (W - 1)) == 0:                             # power-of-two W
            shift = Cout
            while shift < Lo:
                s1 = s1 + pltpu.roll(s1, shift=shift, axis=1)
                s2 = s2 + pltpu.roll(s2, shift=shift, axis=1)
                shift *= 2
        else:                                              # general W fallback
            t1, t2 = s1, s2
            for k in range(1, W):
                t1 = t1 + pltpu.roll(s1, shift=k * Cout, axis=1)
                t2 = t2 + pltpu.roll(s2, shift=k * Cout, axis=1)
            s1, s2 = t1, t2
        mean = s1 * (1.0 / count)
        var = jnp.maximum(s2 * (1.0 / count) - mean * mean, 0.0)  # biased var
        return gamma * (y - mean) * lax.rsqrt(var + EPS) + beta

    def kernel(x_ref, w1_ref, w2_ref, ws_ref,
               g1_ref, b1_ref, g2_ref, b2_ref, gs_ref, bs_ref,
               o_ref, stk1_ref, stk2_ref):
        # ---- conv1: tap-stacked operand written ONCE to VMEM -------------
        # lanes [0:Li]      <- input row h-1  (kh = 0 tap, zero at h = 0)
        # lanes [Li:2Li]    <- input row h    (kh = 1 tap)
        # lanes [2Li:3Li]   <- input row h+1  (kh = 2 tap, zero at h = H-1)
        stk1_ref[:, 0:1, 0:Li] = jnp.zeros((N, 1, Li), jnp.bfloat16)
        stk1_ref[:, 1:H, 0:Li] = x_ref[:, 0:H - 1, :]
        stk1_ref[:, :, Li:2 * Li] = x_ref[...]
        stk1_ref[:, 0:H - 1, 2 * Li:3 * Li] = x_ref[:, 1:H, :]
        stk1_ref[:, H - 1:H, 2 * Li:3 * Li] = jnp.zeros((N, 1, Li), jnp.bfloat16)

        # Single fat matmul per conv (K = 3*Li); contiguous read, f32 accum.
        acc1 = jnp.dot(stk1_ref[...].reshape(R, 3 * Li), w1_ref[...],
                       preferred_element_type=jnp.float32)
        y1 = jnp.maximum(bn(acc1, g1_ref[...], b1_ref[...]), 0.0)
        y1_b = y1.astype(jnp.bfloat16).reshape(N, H, Lo)

        # ---- conv2: same single-matmul tap-stacked structure (K = 3*Lo) ---
        stk2_ref[:, 0:1, 0:Lo] = jnp.zeros((N, 1, Lo), jnp.bfloat16)
        stk2_ref[:, 1:H, 0:Lo] = y1_b[:, 0:H - 1, :]
        stk2_ref[:, :, Lo:2 * Lo] = y1_b
        stk2_ref[:, 0:H - 1, 2 * Lo:3 * Lo] = y1_b[:, 1:H, :]
        stk2_ref[:, H - 1:H, 2 * Lo:3 * Lo] = jnp.zeros((N, 1, Lo), jnp.bfloat16)

        acc2 = jnp.dot(stk2_ref[...].reshape(R, 3 * Lo), w2_ref[...],
                       preferred_element_type=jnp.float32)
        out2 = bn(acc2, g2_ref[...], b2_ref[...])

        # ---- projection shortcut: block-diagonal 1x1 conv + BN ------------
        sc = jnp.dot(x_ref[...].reshape(R, Li), ws_ref[...],
                     preferred_element_type=jnp.float32)
        sc = bn(sc, gs_ref[...], bs_ref[...])

        # ---- residual add + relu; lane-dense (W*Cout) unmasked store ------
        o_ref[...] = jnp.maximum(out2 + sc, 0.0).reshape(N, H, Lo)

    def full_spec(shape):
        nd = len(shape)
        return pl.BlockSpec(shape, lambda i, _nd=nd: (0,) * _nd)

    out_slab = pl.pallas_call(
        kernel,
        out_shape=jax.ShapeDtypeStruct((N, H, Lo), jnp.float32),
        grid=(1,),
        in_specs=[
            full_spec((N, H, Li)),        # x slab
            full_spec((3 * Li, Lo)),      # conv1 banded weights, kh packed on K
            full_spec((3 * Lo, Lo)),      # conv2 banded weights, kh packed on K
            full_spec((Li, Lo)),          # shortcut block-diagonal weight
            full_spec((1, Lo)), full_spec((1, Lo)),   # gamma1, beta1
            full_spec((1, Lo)), full_spec((1, Lo)),   # gamma2, beta2
            full_spec((1, Lo)), full_spec((1, Lo)),   # gamma_s, beta_s
        ],
        out_specs=full_spec((N, H, Lo)),
        scratch_shapes=[
            pltpu.VMEM((N, H, 3 * Li), jnp.bfloat16),   # conv1 tap-stacked operand
            pltpu.VMEM((N, H, 3 * Lo), jnp.bfloat16),   # conv2 tap-stacked operand
        ],
        compiler_params=pltpu.CompilerParams(
            dimension_semantics=("arbitrary",),
            vmem_limit_bytes=32 * 1024 * 1024),
    )(x_slab, prep["w1p"], prep["w2p"], prep["wsp"],
      prep["g1"], prep["b1"], prep["g2"], prep["b2"], prep["gs"], prep["bs"])

    out = out_slab.reshape(N, H, W, Cout)
    return jnp.transpose(out, (0, 3, 1, 2))


def _reference(x_nchw, params):
    """Pure-JAX reference mirroring the PyTorch forward (train-mode BN), using
    the same bf16 quantization of conv inputs/weights as the kernel."""
    q = lambda a: a.astype(jnp.bfloat16).astype(jnp.float32)
    x = q(jnp.transpose(x_nchw, (0, 2, 3, 1)).astype(jnp.float32))  # NHWC
    w1, w2, ws = q(params["w1"]), q(params["w2"]), q(params["ws"])
    dn = lax.conv_dimension_numbers(x.shape, w1.shape, ("NHWC", "HWIO", "NHWC"))

    def bn(y, g, b):
        mean = jnp.mean(y, axis=(0, 1, 2), keepdims=True)
        var = jnp.mean((y - mean) ** 2, axis=(0, 1, 2), keepdims=True)
        return g.reshape(1, 1, 1, -1) * (y - mean) * lax.rsqrt(var + EPS) \
            + b.reshape(1, 1, 1, -1)

    y = lax.conv_general_dilated(x, w1, (1, 1), "SAME", dimension_numbers=dn)
    y = jnp.maximum(bn(y, params["g1"], params["b1"]), 0.0)
    y = lax.conv_general_dilated(q(y), w2, (1, 1), "SAME", dimension_numbers=dn)
    y = bn(y, params["g2"], params["b2"])
    s = jnp.einsum("nhwi,io->nhwo", x, ws)
    s = bn(s, params["gs"], params["bs"])
    out = jnp.maximum(y + s, 0.0)
    return jnp.transpose(out, (0, 3, 1, 2))


def make_params(in_planes, planes, key):
    k1, k2, k3 = jax.random.split(key, 3)
    return {
        "w1": 0.1 * jax.random.normal(k1, (3, 3, in_planes, planes), jnp.float32),
        "w2": 0.1 * jax.random.normal(k2, (3, 3, planes, planes), jnp.float32),
        "ws": 0.1 * jax.random.normal(k3, (in_planes, planes), jnp.float32),
        "g1": jnp.ones((1, planes), jnp.float32),
        "b1": jnp.zeros((1, planes), jnp.float32),
        "g2": jnp.ones((1, planes), jnp.float32),
        "b2": jnp.zeros((1, planes), jnp.float32),
        "gs": jnp.ones((1, planes), jnp.float32),
        "bs": jnp.zeros((1, planes), jnp.float32),
    }


if __name__ == "__main__":
    key = jax.random.PRNGKey(0)
    kx, kp = jax.random.split(key)

    N, in_planes, planes, H, W = 2, 4, 8, 16, 16
    x = jax.random.normal(kx, (N, in_planes, H, W), jnp.float32)  # NCHW input
    params = make_params(in_planes, planes, kp)

    # Hoisted parameter prep (done once, reused across calls).
    prep = jax.block_until_ready(pack_params(params, W))

    out = jax.block_until_ready(basic_block(x, prep))

    ref = jax.block_until_ready(_reference(x, params))
    assert out.shape == (N, planes, H, W)
    # Tolerance accounts for bf16 rounding of conv inputs/intermediates
    # (kernel and reference round independently-computed values).
    assert jnp.allclose(out, ref, atol=1e-2, rtol=1e-2), (
        float(jnp.max(jnp.abs(out - ref))))

    print("KERNEL_OK")
</pallas_src>

<mosaic_0001>
module attributes {stable_mosaic.version = 11 : i64} {
  func.func @kernel(%arg0: i32, %arg1: memref<2x16x64xbf16, #tpu.memory_space<vmem>>, %arg2: memref<192x128xbf16, #tpu.memory_space<vmem>>, %arg3: memref<384x128xbf16, #tpu.memory_space<vmem>>, %arg4: memref<64x128xbf16, #tpu.memory_space<vmem>>, %arg5: memref<1x128xf32, #tpu.memory_space<vmem>>, %arg6: memref<1x128xf32, #tpu.memory_space<vmem>>, %arg7: memref<1x128xf32, #tpu.memory_space<vmem>>, %arg8: memref<1x128xf32, #tpu.memory_space<vmem>>, %arg9: memref<1x128xf32, #tpu.memory_space<vmem>>, %arg10: memref<1x128xf32, #tpu.memory_space<vmem>>, %arg11: memref<2x16x128xf32, #tpu.memory_space<vmem>>, %arg12: memref<2x16x192xbf16, #tpu.memory_space<vmem>>, %arg13: memref<2x16x384xbf16, #tpu.memory_space<vmem>>) attributes {dimension_semantics = [#tpu.dimension_semantics<arbitrary>], iteration_bounds = array<i64: 1>, scalar_prefetch = 0 : i64, scratch_operands = 2 : i64, tpu.core_type = #tpu.core_type<tc>, window_params = [{pipeline_mode = #tpu.pipeline_mode<synchronous>, transform_indices = @transform_0, window_bounds = array<i64: 2, 16, 64>}, {pipeline_mode = #tpu.pipeline_mode<synchronous>, transform_indices = @transform_1, window_bounds = array<i64: 192, 128>}, {pipeline_mode = #tpu.pipeline_mode<synchronous>, transform_indices = @transform_2, window_bounds = array<i64: 384, 128>}, {pipeline_mode = #tpu.pipeline_mode<synchronous>, transform_indices = @transform_3, window_bounds = array<i64: 64, 128>}, {pipeline_mode = #tpu.pipeline_mode<synchronous>, transform_indices = @transform_4, window_bounds = array<i64: 1, 128>}, {pipeline_mode = #tpu.pipeline_mode<synchronous>, transform_indices = @transform_5, window_bounds = array<i64: 1, 128>}, {pipeline_mode = #tpu.pipeline_mode<synchronous>, transform_indices = @transform_6, window_bounds = array<i64: 1, 128>}, {pipeline_mode = #tpu.pipeline_mode<synchronous>, transform_indices = @transform_7, window_bounds = array<i64: 1, 128>}, {pipeline_mode = #tpu.pipeline_mode<synchronous>, transform_indices = @transform_8, window_bounds = array<i64: 1, 128>}, {pipeline_mode = #tpu.pipeline_mode<synchronous>, transform_indices = @transform_9, window_bounds = array<i64: 1, 128>}, {pipeline_mode = #tpu.pipeline_mode<synchronous>, transform_indices = @transform_10, window_bounds = array<i64: 2, 16, 128>}]} {
    %cst = arith.constant 0.000000e+00 : bf16
    %0 = vector.broadcast %cst : bf16 to vector<2x1x64xbf16>
    %c0 = arith.constant 0 : index
    %c0_0 = arith.constant 0 : index
    %c0_1 = arith.constant 0 : index
    %1 = vector.load %arg12[%c0, %c0_0, %c0_1] : memref<2x16x192xbf16, #tpu.memory_space<vmem>>, vector<2x1x64xbf16>
    tpu.vector_store %arg12[%c0, %c0_0, %c0_1], %0 {strides = array<i32>} : memref<2x16x192xbf16, #tpu.memory_space<vmem>>, vector<2x1x64xbf16>,
    %c0_2 = arith.constant 0 : index
    %c0_3 = arith.constant 0 : index
    %c0_4 = arith.constant 0 : index
    %2 = vector.load %arg1[%c0_2, %c0_3, %c0_4] : memref<2x16x64xbf16, #tpu.memory_space<vmem>>, vector<2x15x64xbf16>
    %c0_5 = arith.constant 0 : index
    %c1 = arith.constant 1 : index
    %c0_6 = arith.constant 0 : index
    %3 = vector.load %arg12[%c0_5, %c1, %c0_6] : memref<2x16x192xbf16, #tpu.memory_space<vmem>>, vector<2x15x64xbf16>
    tpu.vector_store %arg12[%c0_5, %c1, %c0_6], %2 {strides = array<i32>} : memref<2x16x192xbf16, #tpu.memory_space<vmem>>, vector<2x15x64xbf16>,
    %c0_7 = arith.constant 0 : index
    %c0_8 = arith.constant 0 : index
    %c0_9 = arith.constant 0 : index
    %4 = vector.load %arg1[%c0_7, %c0_8, %c0_9] : memref<2x16x64xbf16, #tpu.memory_space<vmem>>, vector<2x16x64xbf16>
    %c0_10 = arith.constant 0 : index
    %c0_11 = arith.constant 0 : index
    %c64 = arith.constant 64 : index
    %5 = vector.load %arg12[%c0_10, %c0_11, %c64] : memref<2x16x192xbf16, #tpu.memory_space<vmem>>, vector<2x16x64xbf16>
    tpu.vector_store %arg12[%c0_10, %c0_11, %c64], %4 {strides = array<i32>} : memref<2x16x192xbf16, #tpu.memory_space<vmem>>, vector<2x16x64xbf16>,
    %c0_12 = arith.constant 0 : index
    %c1_13 = arith.constant 1 : index
    %c0_14 = arith.constant 0 : index
    %6 = vector.load %arg1[%c0_12, %c1_13, %c0_14] : memref<2x16x64xbf16, #tpu.memory_space<vmem>>, vector<2x15x64xbf16>
    %c0_15 = arith.constant 0 : index
    %c0_16 = arith.constant 0 : index
    %c128 = arith.constant 128 : index
    %7 = vector.load %arg12[%c0_15, %c0_16, %c128] : memref<2x16x192xbf16, #tpu.memory_space<vmem>>, vector<2x15x64xbf16>
    tpu.vector_store %arg12[%c0_15, %c0_16, %c128], %6 {strides = array<i32>} : memref<2x16x192xbf16, #tpu.memory_space<vmem>>, vector<2x15x64xbf16>,
    %cst_17 = arith.constant 0.000000e+00 : bf16
    %8 = vector.broadcast %cst_17 : bf16 to vector<2x1x64xbf16>
    %c0_18 = arith.constant 0 : index
    %c15 = arith.constant 15 : index
    %c128_19 = arith.constant 128 : index
    %9 = vector.load %arg12[%c0_18, %c15, %c128_19] : memref<2x16x192xbf16, #tpu.memory_space<vmem>>, vector<2x1x64xbf16>
    tpu.vector_store %arg12[%c0_18, %c15, %c128_19], %8 {strides = array<i32>} : memref<2x16x192xbf16, #tpu.memory_space<vmem>>, vector<2x1x64xbf16>,
    %c0_20 = arith.constant 0 : index
    %c0_21 = arith.constant 0 : index
    %c0_22 = arith.constant 0 : index
    %10 = vector.load %arg12[%c0_20, %c0_21, %c0_22] : memref<2x16x192xbf16, #tpu.memory_space<vmem>>, vector<2x16x192xbf16>
    %11 = vector.shape_cast %10 : vector<2x16x192xbf16> to vector<32x192xbf16>
    %c0_23 = arith.constant 0 : index
    %c0_24 = arith.constant 0 : index
    %12 = vector.load %arg2[%c0_23, %c0_24] : memref<192x128xbf16, #tpu.memory_space<vmem>>, vector<192x128xbf16>
    %cst_25 = arith.constant dense<0.000000e+00> : vector<32x128xf32>
    %13 = tpu.matmul %11, %12, %cst_25 {dimension_numbers = #tpu.dot_dimension_numbers<[1], [0], [0], [1], [0, 0, 1, 1], [], []>} : vector<32x192xbf16>, vector<192x128xbf16>, vector<32x128xf32> -> vector<32x128xf32>
    %c0_26 = arith.constant 0 : index
    %c0_27 = arith.constant 0 : index
    %14 = vector.load %arg5[%c0_26, %c0_27] : memref<1x128xf32, #tpu.memory_space<vmem>>, vector<1x128xf32>
    %c0_28 = arith.constant 0 : index
    %c0_29 = arith.constant 0 : index
    %15 = vector.load %arg6[%c0_28, %c0_29] : memref<1x128xf32, #tpu.memory_space<vmem>>, vector<1x128xf32>
    %cst_30 = arith.constant dense<0.000000e+00> : vector<128xf32>
    %16 = vector.multi_reduction <add>, %13, %cst_30 [0] : vector<32x128xf32> to vector<128xf32>
    %17 = vector.shape_cast %16 : vector<128xf32> to vector<1x128xf32>
    %18 = arith.mulf %13, %13 : vector<32x128xf32>
    %cst_31 = arith.constant dense<0.000000e+00> : vector<128xf32>
    %19 = vector.multi_reduction <add>, %18, %cst_31 [0] : vector<32x128xf32> to vector<128xf32>
    %20 = vector.shape_cast %19 : vector<128xf32> to vector<1x128xf32>
    %c8_i32 = arith.constant 8 : i32
    %21 = tpu.dynamic_rotate %17 by %c8_i32 dim 1 : vector<1x128xf32>, i32 -> vector<1x128xf32>
    %22 = arith.addf %17, %21 : vector<1x128xf32>
    %c8_i32_32 = arith.constant 8 : i32
    %23 = tpu.dynamic_rotate %20 by %c8_i32_32 dim 1 : vector<1x128xf32>, i32 -> vector<1x128xf32>
    %24 = arith.addf %20, %23 : vector<1x128xf32>
    %c16_i32 = arith.constant 16 : i32
    %25 = tpu.dynamic_rotate %22 by %c16_i32 dim 1 : vector<1x128xf32>, i32 -> vector<1x128xf32>
    %26 = arith.addf %22, %25 : vector<1x128xf32>
    %c16_i32_33 = arith.constant 16 : i32
    %27 = tpu.dynamic_rotate %24 by %c16_i32_33 dim 1 : vector<1x128xf32>, i32 -> vector<1x128xf32>
    %28 = arith.addf %24, %27 : vector<1x128xf32>
    %c32_i32 = arith.constant 32 : i32
    %29 = tpu.dynamic_rotate %26 by %c32_i32 dim 1 : vector<1x128xf32>, i32 -> vector<1x128xf32>
    %30 = arith.addf %26, %29 : vector<1x128xf32>
    %c32_i32_34 = arith.constant 32 : i32
    %31 = tpu.dynamic_rotate %28 by %c32_i32_34 dim 1 : vector<1x128xf32>, i32 -> vector<1x128xf32>
    %32 = arith.addf %28, %31 : vector<1x128xf32>
    %c64_i32 = arith.constant 64 : i32
    %33 = tpu.dynamic_rotate %30 by %c64_i32 dim 1 : vector<1x128xf32>, i32 -> vector<1x128xf32>
    %34 = arith.addf %30, %33 : vector<1x128xf32>
    %c64_i32_35 = arith.constant 64 : i32
    %35 = tpu.dynamic_rotate %32 by %c64_i32_35 dim 1 : vector<1x128xf32>, i32 -> vector<1x128xf32>
    %36 = arith.addf %32, %35 : vector<1x128xf32>
    %cst_36 = arith.constant 0.001953125 : f32
    %37 = vector.broadcast %cst_36 : f32 to vector<1x128xf32>
    %38 = arith.mulf %34, %37 : vector<1x128xf32>
    %cst_37 = arith.constant 0.001953125 : f32
    %39 = vector.broadcast %cst_37 : f32 to vector<1x128xf32>
    %40 = arith.mulf %36, %39 : vector<1x128xf32>
    %41 = arith.mulf %38, %38 : vector<1x128xf32>
    %42 = arith.subf %40, %41 : vector<1x128xf32>
    %cst_38 = arith.constant 0.000000e+00 : f32
    %43 = vector.broadcast %cst_38 : f32 to vector<1x128xf32>
    %44 = arith.maximumf %42, %43 : vector<1x128xf32>
    %45 = vector.broadcast %38 : vector<1x128xf32> to vector<32x128xf32>
    %46 = arith.subf %13, %45 : vector<32x128xf32>
    %47 = vector.broadcast %14 : vector<1x128xf32> to vector<32x128xf32>
    %48 = arith.mulf %47, %46 : vector<32x128xf32>
    %cst_39 = arith.constant 9.99999974E-6 : f32
    %49 = vector.broadcast %cst_39 : f32 to vector<1x128xf32>
    %50 = arith.addf %44, %49 : vector<1x128xf32>
    %51 = math.rsqrt %50 : vector<1x128xf32>
    %52 = vector.broadcast %51 : vector<1x128xf32> to vector<32x128xf32>
    %53 = arith.mulf %48, %52 : vector<32x128xf32>
    %54 = vector.broadcast %15 : vector<1x128xf32> to vector<32x128xf32>
    %55 = arith.addf %53, %54 : vector<32x128xf32>
    %cst_40 = arith.constant 0.000000e+00 : f32
    %56 = vector.broadcast %cst_40 : f32 to vector<32x128xf32>
    %57 = arith.maximumf %55, %56 : vector<32x128xf32>
    %58 = arith.truncf %57 : vector<32x128xf32> to vector<32x128xbf16>
    %59 = vector.shape_cast %58 : vector<32x128xbf16> to vector<2x16x128xbf16>
    %cst_41 = arith.constant 0.000000e+00 : bf16
    %60 = vector.broadcast %cst_41 : bf16 to vector<2x1x128xbf16>
    %c0_42 = arith.constant 0 : index
    %c0_43 = arith.constant 0 : index
    %c0_44 = arith.constant 0 : index
    %61 = vector.load %arg13[%c0_42, %c0_43, %c0_44] : memref<2x16x384xbf16, #tpu.memory_space<vmem>>, vector<2x1x128xbf16>
    tpu.vector_store %arg13[%c0_42, %c0_43, %c0_44], %60 {strides = array<i32>} : memref<2x16x384xbf16, #tpu.memory_space<vmem>>, vector<2x1x128xbf16>,
    %62 = vector.extract_strided_slice %59 {offsets = [0, 0, 0], sizes = [2, 15, 128], strides = [1, 1, 1]} : vector<2x16x128xbf16> to vector<2x15x128xbf16>
    %c0_45 = arith.constant 0 : index
    %c1_46 = arith.constant 1 : index
    %c0_47 = arith.constant 0 : index
    %63 = vector.load %arg13[%c0_45, %c1_46, %c0_47] : memref<2x16x384xbf16, #tpu.memory_space<vmem>>, vector<2x15x128xbf16>
    tpu.vector_store %arg13[%c0_45, %c1_46, %c0_47], %62 {strides = array<i32>} : memref<2x16x384xbf16, #tpu.memory_space<vmem>>, vector<2x15x128xbf16>,
    %c0_48 = arith.constant 0 : index
    %c0_49 = arith.constant 0 : index
    %c128_50 = arith.constant 128 : index
    %64 = vector.load %arg13[%c0_48, %c0_49, %c128_50] : memref<2x16x384xbf16, #tpu.memory_space<vmem>>, vector<2x16x128xbf16>
    tpu.vector_store %arg13[%c0_48, %c0_49, %c128_50], %59 {strides = array<i32>} : memref<2x16x384xbf16, #tpu.memory_space<vmem>>, vector<2x16x128xbf16>,
    %65 = vector.extract_strided_slice %59 {offsets = [0, 1, 0], sizes = [2, 15, 128], strides = [1, 1, 1]} : vector<2x16x128xbf16> to vector<2x15x128xbf16>
    %c0_51 = arith.constant 0 : index
    %c0_52 = arith.constant 0 : index
    %c256 = arith.constant 256 : index
    %66 = vector.load %arg13[%c0_51, %c0_52, %c256] : memref<2x16x384xbf16, #tpu.memory_space<vmem>>, vector<2x15x128xbf16>
    tpu.vector_store %arg13[%c0_51, %c0_52, %c256], %65 {strides = array<i32>} : memref<2x16x384xbf16, #tpu.memory_space<vmem>>, vector<2x15x128xbf16>,
    %cst_53 = arith.constant 0.000000e+00 : bf16
    %67 = vector.broadcast %cst_53 : bf16 to vector<2x1x128xbf16>
    %c0_54 = arith.constant 0 : index
    %c15_55 = arith.constant 15 : index
    %c256_56 = arith.constant 256 : index
    %68 = vector.load %arg13[%c0_54, %c15_55, %c256_56] : memref<2x16x384xbf16, #tpu.memory_space<vmem>>, vector<2x1x128xbf16>
    tpu.vector_store %arg13[%c0_54, %c15_55, %c256_56], %67 {strides = array<i32>} : memref<2x16x384xbf16, #tpu.memory_space<vmem>>, vector<2x1x128xbf16>,
    %c0_57 = arith.constant 0 : index
    %c0_58 = arith.constant 0 : index
    %c0_59 = arith.constant 0 : index
    %69 = vector.load %arg13[%c0_57, %c0_58, %c0_59] : memref<2x16x384xbf16, #tpu.memory_space<vmem>>, vector<2x16x384xbf16>
    %70 = vector.shape_cast %69 : vector<2x16x384xbf16> to vector<32x384xbf16>
    %c0_60 = arith.constant 0 : index
    %c0_61 = arith.constant 0 : index
    %71 = vector.load %arg3[%c0_60, %c0_61] : memref<384x128xbf16, #tpu.memory_space<vmem>>, vector<384x128xbf16>
    %cst_62 = arith.constant dense<0.000000e+00> : vector<32x128xf32>
    %72 = tpu.matmul %70, %71, %cst_62 {dimension_numbers = #tpu.dot_dimension_numbers<[1], [0], [0], [1], [0, 0, 1, 1], [], []>} : vector<32x384xbf16>, vector<384x128xbf16>, vector<32x128xf32> -> vector<32x128xf32>
    %c0_63 = arith.constant 0 : index
    %c0_64 = arith.constant 0 : index
    %73 = vector.load %arg7[%c0_63, %c0_64] : memref<1x128xf32, #tpu.memory_space<vmem>>, vector<1x128xf32>
    %c0_65 = arith.constant 0 : index
    %c0_66 = arith.constant 0 : index
    %74 = vector.load %arg8[%c0_65, %c0_66] : memref<1x128xf32, #tpu.memory_space<vmem>>, vector<1x128xf32>
    %cst_67 = arith.constant dense<0.000000e+00> : vector<128xf32>
    %75 = vector.multi_reduction <add>, %72, %cst_67 [0] : vector<32x128xf32> to vector<128xf32>
    %76 = vector.shape_cast %75 : vector<128xf32> to vector<1x128xf32>
    %77 = arith.mulf %72, %72 : vector<32x128xf32>
    %cst_68 = arith.constant dense<0.000000e+00> : vector<128xf32>
    %78 = vector.multi_reduction <add>, %77, %cst_68 [0] : vector<32x128xf32> to vector<128xf32>
    %79 = vector.shape_cast %78 : vector<128xf32> to vector<1x128xf32>
    %c8_i32_69 = arith.constant 8 : i32
    %80 = tpu.dynamic_rotate %76 by %c8_i32_69 dim 1 : vector<1x128xf32>, i32 -> vector<1x128xf32>
    %81 = arith.addf %76, %80 : vector<1x128xf32>
    %c8_i32_70 = arith.constant 8 : i32
    %82 = tpu.dynamic_rotate %79 by %c8_i32_70 dim 1 : vector<1x128xf32>, i32 -> vector<1x128xf32>
    %83 = arith.addf %79, %82 : vector<1x128xf32>
    %c16_i32_71 = arith.constant 16 : i32
    %84 = tpu.dynamic_rotate %81 by %c16_i32_71 dim 1 : vector<1x128xf32>, i32 -> vector<1x128xf32>
    %85 = arith.addf %81, %84 : vector<1x128xf32>
    %c16_i32_72 = arith.constant 16 : i32
    %86 = tpu.dynamic_rotate %83 by %c16_i32_72 dim 1 : vector<1x128xf32>, i32 -> vector<1x128xf32>
    %87 = arith.addf %83, %86 : vector<1x128xf32>
    %c32_i32_73 = arith.constant 32 : i32
    %88 = tpu.dynamic_rotate %85 by %c32_i32_73 dim 1 : vector<1x128xf32>, i32 -> vector<1x128xf32>
    %89 = arith.addf %85, %88 : vector<1x128xf32>
    %c32_i32_74 = arith.constant 32 : i32
    %90 = tpu.dynamic_rotate %87 by %c32_i32_74 dim 1 : vector<1x128xf32>, i32 -> vector<1x128xf32>
    %91 = arith.addf %87, %90 : vector<1x128xf32>
    %c64_i32_75 = arith.constant 64 : i32
    %92 = tpu.dynamic_rotate %89 by %c64_i32_75 dim 1 : vector<1x128xf32>, i32 -> vector<1x128xf32>
    %93 = arith.addf %89, %92 : vector<1x128xf32>
    %c64_i32_76 = arith.constant 64 : i32
    %94 = tpu.dynamic_rotate %91 by %c64_i32_76 dim 1 : vector<1x128xf32>, i32 -> vector<1x128xf32>
    %95 = arith.addf %91, %94 : vector<1x128xf32>
    %cst_77 = arith.constant 0.001953125 : f32
    %96 = vector.broadcast %cst_77 : f32 to vector<1x128xf32>
    %97 = arith.mulf %93, %96 : vector<1x128xf32>
    %cst_78 = arith.constant 0.001953125 : f32
    %98 = vector.broadcast %cst_78 : f32 to vector<1x128xf32>
    %99 = arith.mulf %95, %98 : vector<1x128xf32>
    %100 = arith.mulf %97, %97 : vector<1x128xf32>
    %101 = arith.subf %99, %100 : vector<1x128xf32>
    %cst_79 = arith.constant 0.000000e+00 : f32
    %102 = vector.broadcast %cst_79 : f32 to vector<1x128xf32>
    %103 = arith.maximumf %101, %102 : vector<1x128xf32>
    %104 = vector.broadcast %97 : vector<1x128xf32> to vector<32x128xf32>
    %105 = arith.subf %72, %104 : vector<32x128xf32>
    %106 = vector.broadcast %73 : vector<1x128xf32> to vector<32x128xf32>
    %107 = arith.mulf %106, %105 : vector<32x128xf32>
    %cst_80 = arith.constant 9.99999974E-6 : f32
    %108 = vector.broadcast %cst_80 : f32 to vector<1x128xf32>
    %109 = arith.addf %103, %108 : vector<1x128xf32>
    %110 = math.rsqrt %109 : vector<1x128xf32>
    %111 = vector.broadcast %110 : vector<1x128xf32> to vector<32x128xf32>
    %112 = arith.mulf %107, %111 : vector<32x128xf32>
    %113 = vector.broadcast %74 : vector<1x128xf32> to vector<32x128xf32>
    %114 = arith.addf %112, %113 : vector<32x128xf32>
    %c0_81 = arith.constant 0 : index
    %c0_82 = arith.constant 0 : index
    %c0_83 = arith.constant 0 : index
    %115 = vector.load %arg1[%c0_81, %c0_82, %c0_83] : memref<2x16x64xbf16, #tpu.memory_space<vmem>>, vector<2x16x64xbf16>
    %116 = vector.shape_cast %115 : vector<2x16x64xbf16> to vector<32x64xbf16>
    %c0_84 = arith.constant 0 : index
    %c0_85 = arith.constant 0 : index
    %117 = vector.load %arg4[%c0_84, %c0_85] : memref<64x128xbf16, #tpu.memory_space<vmem>>, vector<64x128xbf16>
    %cst_86 = arith.constant dense<0.000000e+00> : vector<32x128xf32>
    %118 = tpu.matmul %116, %117, %cst_86 {dimension_numbers = #tpu.dot_dimension_numbers<[1], [0], [0], [1], [0, 0, 1, 1], [], []>} : vector<32x64xbf16>, vector<64x128xbf16>, vector<32x128xf32> -> vector<32x128xf32>
    %c0_87 = arith.constant 0 : index
    %c0_88 = arith.constant 0 : index
    %119 = vector.load %arg9[%c0_87, %c0_88] : memref<1x128xf32, #tpu.memory_space<vmem>>, vector<1x128xf32>
    %c0_89 = arith.constant 0 : index
    %c0_90 = arith.constant 0 : index
    %120 = vector.load %arg10[%c0_89, %c0_90] : memref<1x128xf32, #tpu.memory_space<vmem>>, vector<1x128xf32>
    %cst_91 = arith.constant dense<0.000000e+00> : vector<128xf32>
    %121 = vector.multi_reduction <add>, %118, %cst_91 [0] : vector<32x128xf32> to vector<128xf32>
    %122 = vector.shape_cast %121 : vector<128xf32> to vector<1x128xf32>
    %123 = arith.mulf %118, %118 : vector<32x128xf32>
    %cst_92 = arith.constant dense<0.000000e+00> : vector<128xf32>
    %124 = vector.multi_reduction <add>, %123, %cst_92 [0] : vector<32x128xf32> to vector<128xf32>
    %125 = vector.shape_cast %124 : vector<128xf32> to vector<1x128xf32>
    %c8_i32_93 = arith.constant 8 : i32
    %126 = tpu.dynamic_rotate %122 by %c8_i32_93 dim 1 : vector<1x128xf32>, i32 -> vector<1x128xf32>
    %127 = arith.addf %122, %126 : vector<1x128xf32>
    %c8_i32_94 = arith.constant 8 : i32
    %128 = tpu.dynamic_rotate %125 by %c8_i32_94 dim 1 : vector<1x128xf32>, i32 -> vector<1x128xf32>
    %129 = arith.addf %125, %128 : vector<1x128xf32>
    %c16_i32_95 = arith.constant 16 : i32
    %130 = tpu.dynamic_rotate %127 by %c16_i32_95 dim 1 : vector<1x128xf32>, i32 -> vector<1x128xf32>
    %131 = arith.addf %127, %130 : vector<1x128xf32>
    %c16_i32_96 = arith.constant 16 : i32
    %132 = tpu.dynamic_rotate %129 by %c16_i32_96 dim 1 : vector<1x128xf32>, i32 -> vector<1x128xf32>
    %133 = arith.addf %129, %132 : vector<1x128xf32>
    %c32_i32_97 = arith.constant 32 : i32
    %134 = tpu.dynamic_rotate %131 by %c32_i32_97 dim 1 : vector<1x128xf32>, i32 -> vector<1x128xf32>
    %135 = arith.addf %131, %134 : vector<1x128xf32>
    %c32_i32_98 = arith.constant 32 : i32
    %136 = tpu.dynamic_rotate %133 by %c32_i32_98 dim 1 : vector<1x128xf32>, i32 -> vector<1x128xf32>
    %137 = arith.addf %133, %136 : vector<1x128xf32>
    %c64_i32_99 = arith.constant 64 : i32
    %138 = tpu.dynamic_rotate %135 by %c64_i32_99 dim 1 : vector<1x128xf32>, i32 -> vector<1x128xf32>
    %139 = arith.addf %135, %138 : vector<1x128xf32>
    %c64_i32_100 = arith.constant 64 : i32
    %140 = tpu.dynamic_rotate %137 by %c64_i32_100 dim 1 : vector<1x128xf32>, i32 -> vector<1x128xf32>
    %141 = arith.addf %137, %140 : vector<1x128xf32>
    %cst_101 = arith.constant 0.001953125 : f32
    %142 = vector.broadcast %cst_101 : f32 to vector<1x128xf32>
    %143 = arith.mulf %139, %142 : vector<1x128xf32>
    %cst_102 = arith.constant 0.001953125 : f32
    %144 = vector.broadcast %cst_102 : f32 to vector<1x128xf32>
    %145 = arith.mulf %141, %144 : vector<1x128xf32>
    %146 = arith.mulf %143, %143 : vector<1x128xf32>
    %147 = arith.subf %145, %146 : vector<1x128xf32>
    %cst_103 = arith.constant 0.000000e+00 : f32
    %148 = vector.broadcast %cst_103 : f32 to vector<1x128xf32>
    %149 = arith.maximumf %147, %148 : vector<1x128xf32>
    %150 = vector.broadcast %143 : vector<1x128xf32> to vector<32x128xf32>
    %151 = arith.subf %118, %150 : vector<32x128xf32>
    %152 = vector.broadcast %119 : vector<1x128xf32> to vector<32x128xf32>
    %153 = arith.mulf %152, %151 : vector<32x128xf32>
    %cst_104 = arith.constant 9.99999974E-6 : f32
    %154 = vector.broadcast %cst_104 : f32 to vector<1x128xf32>
    %155 = arith.addf %149, %154 : vector<1x128xf32>
    %156 = math.rsqrt %155 : vector<1x128xf32>
    %157 = vector.broadcast %156 : vector<1x128xf32> to vector<32x128xf32>
    %158 = arith.mulf %153, %157 : vector<32x128xf32>
    %159 = vector.broadcast %120 : vector<1x128xf32> to vector<32x128xf32>
    %160 = arith.addf %158, %159 : vector<32x128xf32>
    %161 = arith.addf %114, %160 : vector<32x128xf32>
    %cst_105 = arith.constant 0.000000e+00 : f32
    %162 = vector.broadcast %cst_105 : f32 to vector<32x128xf32>
    %163 = arith.maximumf %161, %162 : vector<32x128xf32>
    %164 = vector.shape_cast %163 : vector<32x128xf32> to vector<2x16x128xf32>
    %c0_106 = arith.constant 0 : index
    %c0_107 = arith.constant 0 : index
    %c0_108 = arith.constant 0 : index
    %165 = vector.load %arg11[%c0_106, %c0_107, %c0_108] : memref<2x16x128xf32, #tpu.memory_space<vmem>>, vector<2x16x128xf32>
    tpu.vector_store %arg11[%c0_106, %c0_107, %c0_108], %164 {strides = array<i32>} : memref<2x16x128xf32, #tpu.memory_space<vmem>>, vector<2x16x128xf32>,
    return
  }
  func.func @transform_0(%arg0: i32) -> (i32, i32, i32) {
    %c0_i32 = arith.constant 0 : i32
    %c0_i32_0 = arith.constant 0 : i32
    %c0_i32_1 = arith.constant 0 : i32
    %c0_i32_2 = arith.constant 0 : i32
    return %c0_i32, %c0_i32_0, %c0_i32_1 : i32, i32, i32
  }
  func.func @transform_1(%arg0: i32) -> (i32, i32) {
    %c0_i32 = arith.constant 0 : i32
    %c0_i32_0 = arith.constant 0 : i32
    %c0_i32_1 = arith.constant 0 : i32
    return %c0_i32, %c0_i32_0 : i32, i32
  }
  func.func @transform_2(%arg0: i32) -> (i32, i32) {
    %c0_i32 = arith.constant 0 : i32
    %c0_i32_0 = arith.constant 0 : i32
    %c0_i32_1 = arith.constant 0 : i32
    return %c0_i32, %c0_i32_0 : i32, i32
  }
  func.func @transform_3(%arg0: i32) -> (i32, i32) {
    %c0_i32 = arith.constant 0 : i32
    %c0_i32_0 = arith.constant 0 : i32
    %c0_i32_1 = arith.constant 0 : i32
    return %c0_i32, %c0_i32_0 : i32, i32
  }
  func.func @transform_4(%arg0: i32) -> (i32, i32) {
    %c0_i32 = arith.constant 0 : i32
    %c0_i32_0 = arith.constant 0 : i32
    %c0_i32_1 = arith.constant 0 : i32
    return %c0_i32, %c0_i32_0 : i32, i32
  }
  func.func @transform_5(%arg0: i32) -> (i32, i32) {
    %c0_i32 = arith.constant 0 : i32
    %c0_i32_0 = arith.constant 0 : i32
    %c0_i32_1 = arith.constant 0 : i32
    return %c0_i32, %c0_i32_0 : i32, i32
  }
  func.func @transform_6(%arg0: i32) -> (i32, i32) {
    %c0_i32 = arith.constant 0 : i32
    %c0_i32_0 = arith.constant 0 : i32
    %c0_i32_1 = arith.constant 0 : i32
    return %c0_i32, %c0_i32_0 : i32, i32
  }
  func.func @transform_7(%arg0: i32) -> (i32, i32) {
    %c0_i32 = arith.constant 0 : i32
    %c0_i32_0 = arith.constant 0 : i32
    %c0_i32_1 = arith.constant 0 : i32
    return %c0_i32, %c0_i32_0 : i32, i32
  }
  func.func @transform_8(%arg0: i32) -> (i32, i32) {
    %c0_i32 = arith.constant 0 : i32
    %c0_i32_0 = arith.constant 0 : i32
    %c0_i32_1 = arith.constant 0 : i32
    return %c0_i32, %c0_i32_0 : i32, i32
  }
  func.func @transform_9(%arg0: i32) -> (i32, i32) {
    %c0_i32 = arith.constant 0 : i32
    %c0_i32_0 = arith.constant 0 : i32
    %c0_i32_1 = arith.constant 0 : i32
    return %c0_i32, %c0_i32_0 : i32, i32
  }
  func.func @transform_10(%arg0: i32) -> (i32, i32, i32) {
    %c0_i32 = arith.constant 0 : i32
    %c0_i32_0 = arith.constant 0 : i32
    %c0_i32_1 = arith.constant 0 : i32
    %c0_i32_2 = arith.constant 0 : i32
    return %c0_i32, %c0_i32_0, %c0_i32_1 : i32, i32, i32
  }
}

</mosaic_0001>

<bundles_post_ra>
// kernel: tpu_custom_call.1
= control target key start
LH: loop header
LB: loop body
LE: loop exit
PB: predicated region body
PF: predicated region fallthrough
CT: control target
= control target key end

     0   :  { %15 = vsyncpa [#allocation5], 0  ;;  %s1824_s0 = inlined_call_operand.hbm [shape: bf16[2,16,64], index: 0, kind: input, shape index: {}]   ;;  %s1825_s1 = inlined_call_operand.hbm [shape: bf16[192,128], index: 1, kind: input, shape index: {}]   ;;  %s1826_s2 = inlined_call_operand.hbm [shape: bf16[384,128], index: 2, kind: input, shape index: {}]   ;;  %s1827_s3 = inlined_call_operand.hbm [shape: bf16[64,128], index: 3, kind: input, shape index: {}]   ;;  %s1828_s4 = inlined_call_operand.vmem [shape: f32[1,128], index: 4, kind: input, shape index: {}]   ;;  %s1829_s5 = inlined_call_operand.vmem [shape: f32[1,128], index: 5, kind: input, shape index: {}]   ;;  %s1830_s6 = inlined_call_operand.vmem [shape: f32[1,128], index: 6, kind: input, shape index: {}]   ;;  %s1831_s7 = inlined_call_operand.vmem [shape: f32[1,128], index: 7, kind: input, shape index: {}]   ;;  %s1832_s8 = inlined_call_operand.vmem [shape: f32[1,128], index: 8, kind: input, shape index: {}]   ;;  %s1833_s9 = inlined_call_operand.vmem [shape: f32[1,128], index: 9, kind: input, shape index: {}]   ;;  %s1834_s10 = inlined_call_operand.hbm [shape: f32[2,16,128], index: 10, kind: output, shape index: {}]  }
   0x1   :  { %16 = vsyncpa [#allocation8], 0 }
   0x2   :  { %17 = vsyncpa [#allocation11], 0 }
   0x3   :  { %18 = vsyncpa [#allocation6], 0  ;;  %s1446_s13 = smov [#allocation7]   ;;  %s1447_s15 = smov [#allocation4]  }
   0x4   :  { %s36_s14 = sshll.u32 %s1446_s13, 4  ;;  %s24_s16 = sshll.u32 %s1447_s15, 4  ;;  %s37_s14 = int_to_ptr.vmem [resolvable:$true] %s36_s14  ;;  %s1513_s16 = int_to_ptr.vmem [resolvable:$true] %s24_s16 }
   0x5   :  { %s1328_s19 = scalar_lea.hbm %s1825_s1, 1536 }
   0x6   :  { %p1329_p0 = scmp.ne.s32.totalorder %s1825_s1, %s1328_s19  ;;  %p1332_p1 = scmp.lt.u32.totalorder %s1328_s19, %s1825_s1 }
   0x8   :  { %p1334_p2 = pnand %p1332_p1, %p1329_p0 }
   0xa   :  { %1337 = shalt.err (!%p1334_p2)
}
   0xb   :  { %s1338_s24 = scalar_lea.vmem %s37_s14, 1536  ;;  %p1343_p4 = scmp.lt.s32.totalorder %s37_s14, %s37_s14 }
   0xc   :  { %p1339_p3 = scmp.ne.s32.totalorder %s37_s14, %s1338_s24  ;;  %p1344_p5 = scmp.lt.s32.totalorder %s1338_s24, %s1338_s24 }
   0xe   :  { %p1345_p6 = por %p1344_p5, %p1343_p4 }
  0x10   :  { %p1346_p7 = pnand %p1345_p6, %p1339_p3 }
  0x12   :  { %1349 = shalt.err (!%p1346_p7)
}
  0x13   :  { %s1448_s25 = smov 64   ;;  %s1449_s26 = smov 4  }
  0x14   :  { %42 = dma.hbm_to_vmem [thread:$0]  %s1825_s1, 1536, %s37_s14, [#allocation8], %s1448_s25, %s1448_s25, %s1449_s26  }
  0x15   :  { %s1350_s11 = scalar_lea.hbm %s1824_s0, 256 }
  0x16   :  { %p1351_p8 = scmp.ne.s32.totalorder %s1824_s0, %s1350_s11  ;;  %p1354_p9 = scmp.lt.u32.totalorder %s1350_s11, %s1824_s0 }
  0x18   :  { %p1356_p10 = pnand %p1354_p9, %p1351_p8 }
  0x1a   :  { %1359 = shalt.err (!%p1356_p10)
}
  0x1b   :  { %s1360_s18 = scalar_lea.vmem %s1513_s16, 256  ;;  %p1365_p12 = scmp.lt.s32.totalorder %s1513_s16, %s1513_s16 }
  0x1c   :  { %p1361_p11 = scmp.ne.s32.totalorder %s1513_s16, %s1360_s18  ;;  %p1366_p13 = scmp.lt.s32.totalorder %s1360_s18, %s1360_s18 }
  0x1e   :  { %p1367_p0 = por %p1366_p13, %p1365_p12 }
  0x20   :  { %p1368_p1 = pnand %p1367_p0, %p1361_p11 }
  0x22   :  { %1371 = shalt.err (!%p1368_p1)
}
  0x23   :  { %30 = dma.hbm_to_vmem [thread:$0]  %s1824_s0, 256, %s1513_s16, [#allocation5], %s1448_s25, %s1448_s25, %s1449_s26  }
  0x24   :  { %s1450_s19 = smov [#allocation9]   ;;  %s1451_s21 = smov [#allocation10]  }
  0x25   :  { %s48_s20 = sshll.u32 %s1450_s19, 4  ;;  %s60_s22 = sshll.u32 %s1451_s21, 4  ;;  %s49_s20 = int_to_ptr.vmem [resolvable:$true] %s48_s20  ;;  %s1550_s22 = int_to_ptr.vmem [resolvable:$true] %s60_s22 }
  0x26   :  { %s1372_s27 = scalar_lea.hbm %s1826_s2, 3072 }
  0x27   :  { %p1373_p2 = scmp.ne.s32.totalorder %s1826_s2, %s1372_s27  ;;  %p1376_p3 = scmp.lt.u32.totalorder %s1372_s27, %s1826_s2 }
  0x29   :  { %p1378_p4 = pnand %p1376_p3, %p1373_p2 }
  0x2b   :  { %1381 = shalt.err (!%p1378_p4)
}
  0x2c   :  { %s1382_s0 = scalar_lea.vmem %s49_s20, 3072  ;;  %p1387_p6 = scmp.lt.s32.totalorder %s49_s20, %s49_s20 }
  0x2d   :  { %p1383_p5 = scmp.ne.s32.totalorder %s49_s20, %s1382_s0  ;;  %p1388_p7 = scmp.lt.s32.totalorder %s1382_s0, %s1382_s0 }
  0x2f   :  { %p1389_p8 = por %p1388_p7, %p1387_p6 }
  0x31   :  { %p1390_p9 = pnand %p1389_p8, %p1383_p5 }
  0x33   :  { %1393 = shalt.err (!%p1390_p9)
}
  0x34   :  { %54 = dma.hbm_to_vmem [thread:$0]  %s1826_s2, 3072, %s49_s20, [#allocation8], %s1448_s25, %s1448_s25, %s1449_s26  }
  0x35   :  { %s1394_s17 = scalar_lea.hbm %s1827_s3, 512 }
  0x36   :  { %p1395_p10 = scmp.ne.s32.totalorder %s1827_s3, %s1394_s17  ;;  %p1398_p11 = scmp.lt.u32.totalorder %s1394_s17, %s1827_s3 }
  0x38   :  { %p1400_p12 = pnand %p1398_p11, %p1395_p10 }
  0x3a   :  { %1403 = shalt.err (!%p1400_p12)
}
  0x3b   :  { %s1404_s21 = scalar_lea.vmem %s1550_s22, 512  ;;  %p1409_p0 = scmp.lt.s32.totalorder %s1550_s22, %s1550_s22 }
  0x3c   :  { %p1405_p13 = scmp.ne.s32.totalorder %s1550_s22, %s1404_s21  ;;  %p1410_p1 = scmp.lt.s32.totalorder %s1404_s21, %s1404_s21 }
  0x3e   :  { %p1411_p2 = por %p1410_p1, %p1409_p0 }
  0x40   :  { %p1412_p3 = pnand %p1411_p2, %p1405_p13 }
  0x42   :  { %1415 = shalt.err (!%p1412_p3)
}
  0x43   :  { %66 = dma.hbm_to_vmem [thread:$0]  %s1827_s3, 512, %s1550_s22, [#allocation11], %s1448_s25, %s1448_s25, %s1449_s26  }
  0x44   :  { %1438 = dma.done.wait [#allocation5], 256  }
  0x45   :  { %1439 = vsyncadd [#allocation5], 4294967040 }
  0x46   :  { %1440 = dma.done.wait [#allocation8], 4608  }
  0x47   :  { %1441 = vsyncadd [#allocation8], 4294962688 }
  0x48   :  { %1442 = dma.done.wait [#allocation11], 512  }
  0x49   :  { %1443 = vsyncadd [#allocation11], 4294966784  ;;  %v1452_v0 = vmov 0   ;;  %v1274_v1 = vld [vmem:[#allocation4] sm:$0xff]   ;;  %v1275_v2 = vld [vmem:[#allocation4 + $0x8] sm:$0xff]   ;;  %vm463_vm0 = vcmask 1040384  }
  0x4a   :  { %317 = vmatprep.subr.bf16.mxu0 %v1452_v0  ;;  %154 = vrot.lane.b32.xlu0 %v1274_v1, %s1448_s25  ;;  %v1276_v3 = vld [vmem:[#allocation7] sm:$0xff]   ;;  %v1277_v4 = vld [vmem:[#allocation7 + $0x8] sm:$0xff]   ;;  %v1278_v5 = vld [vmem:[#allocation7 + $0x10] sm:$0xff]   ;;  %vm93_vm1 = vsmask.f32 256  ;;  %vm92_vm4 = vcmask 516096  }
  0x4b   :  { %318 = vmatpush1.bf16.msra.mxu0 %v1276_v3  ;;  %vm132_vm2 = vsmask.f32 7938  ;;  %vm1592_vm3 = vmand %vm463_vm0, %vm93_vm1  ;;  %v1279_v7 = vld [vmem:[#allocation7 + $0x18] sm:$0xff]   ;;  %v1286_v8 = vld [vmem:[#allocation4] sm:$0xff]   ;;  %vm193_vm5 = vsmask.f32 7424 }
  0x4c   :  { %319 = vmatprep.subr.bf16.mxu0 %v1452_v0  ;;  %v1287_v9 = vld [vmem:[#allocation4 + $0x8] sm:$0xff]   ;;  %v1280_v10 = vld [vmem:[#allocation7 + $0x20] sm:$0xff]   ;;  %vm1597_vm6 = vmand %vm92_vm4, %vm93_vm1  ;;  %vm131_vm7 = vcmask 523264   ;;  %vm202_vm8 = vsmask.f32 7966  ;;  %v178_v13 = vshrl.u32 %v1286_v8, 16 }
  0x4d   :  { %v465_v12 = vld [vmem:[#allocation3] sm:$0x1]  ;;  %v180_v14 = vshll.u32 %v1286_v8, 16  ;;  %v185_v15 = vshrl.u32 %v1287_v9, 16  ;;  %v187_v16 = vshll.u32 %v1287_v9, 16  ;;  %v195_v18 = vld [vmem:[#allocation2 + $0x8] sm:$0xff]  ;;  %vm1608_vm9 = vmand %vm131_vm7, %vm193_vm5 }
  0x4e   :  { %156 = vrot.lane.b32.xlu0 %v1275_v2, %s1448_s25  ;;  %v468_v17 = vld [vmem:[#allocation3 + $0x18] sm:$0x1]  ;;  %v466_v19 = vsel %vm1592_vm3, 0, %v465_v12  ;;  %v95_v21 = vld [vmem:[#allocation2] sm:$0x1]  ;;  %v1288_v26 = vld [vmem:[#allocation4] sm:$0xff]  }
  0x4f   :  { %320 = vmatpush1.bf16.msra.mxu0 %v1277_v4  ;;  %v469_v20 = vsel %vm1592_vm3, 0, %v468_v17  ;;  %v182_v22 = vrot.slane %v180_v14, 1  ;;  %v189_v23 = vrot.slane %v187_v16, 1  ;;  %467 = vst [vmem:[#allocation3] sm:$0x1] %v466_v19  ;;  %v96_v25 = vsel %vm1597_vm6, 0, %v95_v21  ;;  %vm1617_vm11 = vmand %vm131_vm7, %vm132_vm2 }
  0x50   :  { %321 = vmatprep.subr.bf16.mxu0 %v1452_v0  ;;  %470 = vst [vmem:[#allocation3 + $0x18] sm:$0x1] %v469_v20  ;;  %v198_v27 = vld [vmem:[#allocation2 + $0x18] sm:$0xff]  ;;  %97 = vst [vmem:[#allocation2] sm:$0x1] %v96_v25  ;;  %v116_v30 = vshrl.u32 %v1288_v26, 16 }
  0x51   :  { %v183_v28 = vor.u32 %v182_v22, %v178_v13  ;;  %v190_v29 = vor.u32 %v189_v23, %v185_v15  ;;  %v119_v31 = vshll.u32 %v1288_v26, 16  ;;  %v1281_v32 = vld [vmem:[#allocation7 + $0x28] sm:$0xff]   ;;  %vm201_vm10 = vcmask 523271   ;;  %v98_v33 = vld [vmem:[#allocation2 + $0x10] sm:$0x1]  ;;  %v1291_v39 = vld [vmem:[#allocation4 + $0x8] sm:$0xff]  }
  0x52   :  { %v118_v37 = vrot.slane %v116_v30, 7  ;;  %v99_v38 = vsel %vm1597_vm6, 0, %v98_v33  ;;  %v1282_v40 = vld [vmem:[#allocation7 + $0x30] sm:$0xff]   ;;  %vm1628_vm12 = vmand %vm201_vm10, %vm202_vm8  ;;  %v123_v43 = vshrl.u32 %v1291_v39, 16  ;;  %v126_v44 = vshll.u32 %v1291_v39, 16  ;;  %v1283_v47 = vld [vmem:[#allocation7 + $0x38] sm:$0xff]  }
  0x53   :  { %322 = vmatpush1.bf16.msra.mxu0 %v1278_v5  ;;  %v196_v35 = vsel %vm1608_vm9, %v183_v28, %v195_v18  ;;  %v199_v36 = vsel %vm1608_vm9, %v190_v29, %v198_v27  ;;  %100 = vst [vmem:[#allocation2 + $0x10] sm:$0x1] %v99_v38  ;;  %v1284_v53 = vld [vmem:[#allocation7 + $0x40] sm:$0xff]   ;;  %v1285_v57 = vld [vmem:[#allocation7 + $0x48] sm:$0xff]   ;;  %v1289_v58 = vld [vmem:[#allocation7 + $0x50] sm:$0xff]   ;;  %vm160_vm13 = vcmask 1048064  }
  0x54   :  { %323 = vmatprep.subr.bf16.mxu0 %v1452_v0  ;;  %197 = vst [vmem:[#allocation2 + $0x8] sm:$0xff] %v196_v35  ;;  %200 = vst [vmem:[#allocation2 + $0x18] sm:$0xff] %v199_v36  ;;  %v121_v42 = vor.u32 %v119_v31, %v118_v37  ;;  %v125_v46 = vrot.slane %v123_v43, 7  ;;  %v1290_v60 = vld [vmem:[#allocation7 + $0x58] sm:$0xff]   ;;  %v1292_v3 = vld [vmem:[#allocation10] sm:$0xff]   ;;  %s1453_s3 = smov 8  }
  0x55   :  { %v1293_v4 = vld [vmem:[#allocation10 + $0x8] sm:$0xff]   ;;  %v1294_v23 = vld [vmem:[#allocation10 + $0x10] sm:$0xff]   ;;  %v1295_v28 = vld [vmem:[#allocation10 + $0x18] sm:$0xff]   ;;  %s1454_s26 = smov 16   ;;  %s1455_s22 = smov 32   ;;  %vm487_vm14 = vcmask 1047552  }
  0x56   :  { %v128_v49 = vor.u32 %v126_v44, %v125_v46  ;;  %v1296_v29 = vld [vmem:[#allocation4] sm:$0xff]   ;;  %vm1726_vm15 = vmand %vm487_vm14, %vm132_vm2  ;;  %vm510_vm1 = vcmask 1047559   ;;  %s1456_s0 = smov [#allocation12]  }
  0x57   :  { %324 = vmatpush1.bf16.msra.mxu0 %v1279_v7  ;;  %v134_v45 = vld [vmem:[#allocation2] sm:$0xff]  ;;  %vm1731_vm0 = vmand %vm487_vm14, %vm193_vm5  ;;  %s1114_s16 = sshll.u32 %s1456_s0, 4  ;;  %s1115_s16 = int_to_ptr.vmem [resolvable:$true] %s1114_s16 }
  0x58   :  { %325 = vmatprep.subr.bf16.mxu0 %v1452_v0  ;;  %v135_v48 = vsel %vm1617_vm11, %v121_v42, %v134_v45  ;;  %vm511_vm2 = vmand %vm510_vm1, %vm202_vm8  ;;  %p1421_p5 = scmp.lt.s32.totalorder %s1115_s16, %s1115_s16 }
  0x59   :  { %136 = vst [vmem:[#allocation2] sm:$0xff] %v135_v48 }
  0x5a   :  { %v137_v52 = vld [vmem:[#allocation2 + $0x10] sm:$0xff] }
  0x5b   :  { %326 = vmatpush1.bf16.msra.mxu0 %v1280_v10  ;;  %v204_v50 = vld [vmem:[#allocation2 + $0x8] sm:$0x80]  ;;  %v207_v51 = vld [vmem:[#allocation2 + $0x18] sm:$0x80]  ;;  %v138_v56 = vsel %vm1617_vm11, %v128_v49, %v137_v52 }
  0x5c   :  { %327 = vmatprep.subr.bf16.mxu0 %v1452_v0  ;;  %v205_v54 = vsel %vm1628_vm12, 0, %v204_v50  ;;  %v208_v55 = vsel %vm1628_vm12, 0, %v207_v51  ;;  %139 = vst [vmem:[#allocation2 + $0x10] sm:$0xff] %v138_v56 }
  0x5d   :  { %206 = vst [vmem:[#allocation2 + $0x8] sm:$0x80] %v205_v54  ;;  %209 = vst [vmem:[#allocation2 + $0x18] sm:$0x80] %v208_v55 }
  0x5f   :  { %328 = vmatpush1.bf16.msra.mxu0 %v1281_v32  ;;  %v1297_v32 = vld [vmem:[#allocation4 + $0x8] sm:$0xff]  }
  0x60   :  { %329 = vmatprep.subr.bf16.mxu0 %v1452_v0 }
  0x63   :  { %330 = vmatpush1.bf16.msra.mxu0 %v1282_v40 }
  0x64   :  { %331 = vmatprep.subr.bf16.mxu0 %v1452_v0  ;;  %v211_v59 = vld [vmem:[#allocation2 + $0x8] sm:$0xff]  ;;  %v213_v63 = vld [vmem:[#allocation2 + $0x18] sm:$0xff] }
  0x65   :  { %1146 = vmatprep.mubr.msk.bf16.mxu0 %vm131_vm7, %v211_v59 }
  0x67   :  { %332 = vmatpush1.bf16.msra.mxu0 %v1283_v47 }
  0x68   :  { %333 = vmatprep.subr.bf16.mxu0 %v1452_v0 }
  0x6b   :  { %334 = vmatpush1.bf16.msra.mxu0 %v1284_v53 }
  0x6c   :  { %335 = vmatprep.subr.bf16.mxu0 %v1452_v0 }
  0x6f   :  { %336 = vmatpush1.bf16.msra.mxu0 %v1285_v57 }
  0x70   :  { %337 = vmatprep.subr.bf16.mxu0 %v1452_v0 }
  0x73   :  { %338 = vmatpush1.bf16.msra.mxu0 %v1289_v58 }
  0x74   :  { %339 = vmatprep.subr.bf16.mxu0 %v1452_v0 }
  0x77   :  { %340 = vmatpush1.bf16.msra.mxu0 %v1290_v60 }
  0x78   :  { %1250 = vmatprep.subr.bf16.mxu0 %v1292_v3 }
  0xbc   :  { %v155_v61 = vpop.permute.xlu0 %154 }
  0xbd   :  { %161 = vst.msk [vmem:[#allocation2] sm:$0xff] %vm160_vm13, %v155_v61 }
  0xc0   :  { %v157_v62 = vpop.permute.xlu0 %156 }
  0xc1   :  { %162 = vst.msk [vmem:[#allocation2 + $0x10] sm:$0xff] %vm160_vm13, %v157_v62 }
  0xc4   :  { %v210_v1 = vld [vmem:[#allocation2] sm:$0xff] }
  0xc5   :  { %350 = vmatmul.mubr.bf16.vlgmr.msra.gmra.mrb[0].mxu0 %v210_v1 }
  0xc6   :  { %1147 = vmatprep.mubr.msk.bf16.mxu0 %vm131_vm7, %v213_v63  ;;  %1251 = vmatpush3.bf16.msra.mxu0 %v1292_v3 }
  0xc7   :  { %1252 = vmatprep.subr.bf16.mxu0 %v1293_v4 }
  0xc8   :  { %v212_v2 = vld [vmem:[#allocation2 + $0x10] sm:$0xff] }
  0xca   :  { %1253 = vmatpush3.bf16.msra.mxu0 %v1293_v4  ;;  %v1298_v4 = vld [vmem:[#allocation9 + $0x40] sm:$0xff]  }
  0xcb   :  { %1254 = vmatprep.subr.bf16.mxu0 %v1294_v23  ;;  %1186 = vmatprep.subr.bf16.mxu1 %v1298_v4 }
  0xcd   :  { %358 = vmatmul.mubr.bf16.gmra.mrb[4].mxu0 %v212_v2 }
  0xce   :  { %1255 = vmatpush3.bf16.msra.mxu0 %v1294_v23  ;;  %1258 = vmatprep.mubr.msk.bf16.mxu0 %vm131_vm7, %v1296_v29  ;;  %v1305_v23 = vld [vmem:[#allocation9 + $0x18] sm:$0xff]   ;;  %v1311_v29 = vld [vmem:[#allocation9 + $0x30] sm:$0xff]  }
  0xcf   :  { %1256 = vmatprep.subr.bf16.mxu0 %v1295_v28 }
  0xd2   :  { %1257 = vmatpush3.bf16.msra.mxu0 %v1295_v28  ;;  %v1310_v28 = vld [vmem:[#allocation9 + $0x70] sm:$0xff]  }
  0xd5   :  { %1259 = vmatmul.mubr.msk.bf16.vlgmr.msra.gmra.mrb[8].mxu0 %vm131_vm7, %v1297_v32  ;;  %v1700_v32 = vld [vmem:[#allocation9 + $0x80] sm:$0xff]  }
 0x198   :  { %v1648_v0 = vpop.f32.mrb[0].mxu0 }
 0x199   :  { %v353_v5 = vpop.f32.mrb[1].mxu0  ;;  %v377_v7 = vmul.f32 %v1648_v0, %v1648_v0 }
 0x19a   :  { %v1650_v6 = vpop.f32.mrb[2].mxu0  ;;  %v1299_v5 = vld [vmem:[#allocation9] sm:$0xff]  }
 0x19b   :  { %v368_v8 = vadd.f32 %v1650_v6, %v1648_v0  ;;  %v378_v9 = vmul.f32 %v1650_v6, %v1650_v6  ;;  %v356_v10 = vpop.f32.mrb[3].mxu0  ;;  %1187 = vmatpush3.bf16.msra.mxu1 %v1299_v5 }
 0x19d   :  { %v381_v11 = vadd.f32 %v378_v9, %v377_v7  ;;  %v1300_v9 = vld [vmem:[#allocation9 + $0x48] sm:$0xff]  }
 0x19e   :  { %1188 = vmatprep.subr.bf16.mxu1 %v1300_v9 }
 0x1a0   :  { %v1658_v12 = vpop.f32.mrb[4].mxu0 }
 0x1a1   :  { %v369_v13 = vadd.f32 %v368_v8, %v1658_v12  ;;  %v379_v14 = vmul.f32 %v1658_v12, %v1658_v12  ;;  %v361_v15 = vpop.f32.mrb[5].mxu0 }
 0x1a2   :  { %v1663_v16 = vpop.f32.mrb[6].mxu0 }
 0x1a3   :  { %v382_v17 = vadd.f32 %v381_v11, %v379_v14  ;;  %v370_v18 = vadd.f32 %v369_v13, %v1663_v16  ;;  %v380_v19 = vmul.f32 %v1663_v16, %v1663_v16  ;;  %v364_v20 = vpop.f32.mrb[7].mxu0  ;;  %v1301_v13 = vld [vmem:[#allocation9 + $0x8] sm:$0xff]  }
 0x1a4   :  { %1189 = vmatpush3.bf16.msra.mxu1 %v1301_v13  ;;  %v1303_v20 = vld [vmem:[#allocation9 + $0x10] sm:$0xff]  }
 0x1a5   :  { %v371_v21 = vrot.slane %v370_v18, 4  ;;  %v383_v22 = vadd.f32 %v382_v17, %v380_v19  ;;  %v1302_v17 = vld [vmem:[#allocation9 + $0x50] sm:$0xff]  }
 0x1a6   :  { %1190 = vmatprep.subr.bf16.mxu1 %v1302_v17 }
 0x1a7   :  { %v384_v24 = vrot.slane %v383_v22, 4  ;;  %v372_v25 = vadd.f32 %v371_v21, %v370_v18  ;;  %v1304_v21 = vld [vmem:[#allocation9 + $0x58] sm:$0xff]  }
 0x1a8   :  { %v1674_v42 = vpop.f32.mrb[8].mxu0  ;;  %1191 = vmatpush3.bf16.msra.mxu1 %v1303_v20 }
 0x1a9   :  { %v385_v26 = vadd.f32 %v384_v24, %v383_v22  ;;  %v373_v27 = vrot.slane %v372_v25, 2  ;;  %v1676_v43 = vpop.f32.mrb[9].mxu0  ;;  %v1019_v47 = vmul.f32 %v1674_v42, %v1674_v42  ;;  %1192 = vmatprep.subr.bf16.mxu1 %v1304_v21  ;;  %v1306_v24 = vld [vmem:[#allocation9 + $0x60] sm:$0xff]  }
 0x1aa   :  { %v1017_v44 = vmul.f32 %v1676_v43, %v1676_v43  ;;  %v1680_v45 = vpop.f32.mrb[10].mxu0 }
 0x1ab   :  { %v374_v30 = vadd.f32 %v373_v27, %v372_v25  ;;  %v386_v31 = vrot.slane %v385_v26, 2  ;;  %v1682_v46 = vpop.f32.mrb[11].mxu0  ;;  %v1020_v50 = vmul.f32 %v1680_v45, %v1680_v45  ;;  %v1307_v25 = vld [vmem:[#allocation9 + $0x20] sm:$0xff]   ;;  %v1309_v27 = vld [vmem:[#allocation9 + $0x28] sm:$0xff]  }
 0x1ac   :  { %v1008_v48 = vadd.f32 %v1682_v46, %v1676_v43  ;;  %v1018_v49 = vmul.f32 %v1682_v46, %v1682_v46  ;;  %1193 = vmatpush3.bf16.msra.mxu1 %v1305_v23  ;;  %v489_v23 = vld [vmem:[#allocation3] sm:$0xff] }
 0x1ad   :  { %v375_v33 = vrot.slane %v374_v30, 1  ;;  %v387_v34 = vadd.f32 %v386_v31, %v385_v26  ;;  %1194 = vmatprep.subr.bf16.mxu1 %v1306_v24  ;;  %v1308_v26 = vld [vmem:[#allocation9 + $0x68] sm:$0xff]   ;;  %v1313_v31 = vld [vmem:[#allocation9 + $0x38] sm:$0xff]  }
 0x1ae   :  { %v1009_v51 = vadd.f32 %v1674_v42, %v1008_v48  ;;  %v1021_v52 = vadd.f32 %v1018_v49, %v1017_v44 }
 0x1af   :  { %v376_v35 = vadd.f32 %v375_v33, %v374_v30  ;;  %v388_v36 = vrot.slane %v387_v34, 1  ;;  %v1312_v30 = vld [vmem:[#allocation9 + $0x78] sm:$0xff]  }
 0x1b0   :  { %v1010_v53 = vadd.f32 %v1680_v45, %v1009_v51  ;;  %v1022_v54 = vadd.f32 %v1021_v52, %v1019_v47  ;;  %1195 = vmatpush3.bf16.msra.mxu1 %v1307_v25 }
 0x1b1   :  { %390 = vrot.lane.b32.xlu1 %v376_v35, %s1453_s3  ;;  %v389_v37 = vadd.f32 %v388_v36, %v387_v34  ;;  %1196 = vmatprep.subr.bf16.mxu1 %v1308_v26 }
 0x1b2   :  { %v1023_v55 = vadd.f32 %v1022_v54, %v1020_v50  ;;  %v1011_v60 = vrot.slane %v1010_v53, 4 }
 0x1b4   :  { %v1012_v61 = vadd.f32 %v1011_v60, %v1010_v53  ;;  %v1024_v62 = vrot.slane %v1023_v55, 4  ;;  %1197 = vmatpush3.bf16.msra.mxu1 %v1309_v27 }
 0x1b5   :  { %393 = vrot.lane.b32.xlu1 %v389_v37, %s1453_s3  ;;  %1198 = vmatprep.subr.bf16.mxu1 %v1310_v28  ;;  %v492_v28 = vld [vmem:[#allocation3 + $0x18] sm:$0xff] }
 0x1b6   :  { %v1013_v63 = vrot.slane %v1012_v61, 2  ;;  %v1025_v1 = vadd.f32 %v1024_v62, %v1023_v55 }
 0x1b8   :  { %v1014_v2 = vadd.f32 %v1013_v63, %v1012_v61  ;;  %v1026_v3 = vrot.slane %v1025_v1, 2  ;;  %1199 = vmatpush3.bf16.msra.mxu1 %v1311_v29  ;;  %v507_v29 = vld [vmem:[#allocation3 + $0x28] sm:$0xff] }
 0x1b9   :  { %1200 = vmatprep.subr.bf16.mxu1 %v1312_v30  ;;  %v504_v30 = vld [vmem:[#allocation3 + $0x10] sm:$0xff] }
 0x1ba   :  { %v1015_v10 = vrot.slane %v1014_v2, 1  ;;  %v1027_v11 = vadd.f32 %v1026_v3, %v1025_v1 }
 0x1bc   :  { %v1016_v18 = vadd.f32 %v1015_v10, %v1014_v2  ;;  %v1028_v19 = vrot.slane %v1027_v11, 1  ;;  %1201 = vmatpush3.bf16.msra.mxu1 %v1313_v31 }
 0x1bd   :  { %1230 = vmatprep.subr.bf16.mxu1 %v1700_v32 }
 0x1be   :  { %v1029_v22 = vadd.f32 %v1028_v19, %v1027_v11 }
 0x223   :  { %v391_v38 = vpop.permute.xlu1 %390 }
 0x224   :  { %v392_v39 = vadd.f32 %v391_v38, %v376_v35  ;;  %v419_v38 = vlaneseq }
 0x226   :  { %396 = vrot.lane.b32.xlu0 %v392_v39, %s1454_s26  ;;  %v420_v44 = vshrl.u32 %v419_v38, 7 }
 0x227   :  { %v394_v40 = vpop.permute.xlu1 %393 }
 0x228   :  { %v395_v41 = vadd.f32 %v394_v40, %v389_v37  ;;  %v1709_v52 = vsub.s32 0, %v420_v44  ;;  %v1317_v44 = vld [vmem:[#allocation9 + $0x98] sm:$0xff]  }
 0x22a   :  { %399 = vrot.lane.b32.xlu1 %v395_v41, %s1454_s26 }
 0x298   :  { %v397_v56 = vpop.permute.xlu0 %396 }
 0x299   :  { %v398_v57 = vadd.f32 %v397_v56, %v392_v39  ;;  %v1148_v56 = vld [vmem:[%s1828_s4] ss:$0 sm:$0xff] }
 0x29b   :  { %402 = vrot.lane.b32.xlu0 %v398_v57, %s1455_s22 }
 0x29c   :  { %v400_v58 = vpop.permute.xlu1 %399 }
 0x29d   :  { %v401_v59 = vadd.f32 %v400_v58, %v395_v41 }
 0x29f   :  { %405 = vrot.lane.b32.xlu1 %v401_v59, %s1455_s22 }
 0x30d   :  { %v403_v7 = vpop.permute.xlu0 %402 }
 0x30e   :  { %v404_v8 = vadd.f32 %v403_v7, %v398_v57 }
 0x310   :  { %408 = vrot.lane.b32.xlu0 %v404_v8, %s1448_s25 }
 0x311   :  { %v406_v14 = vpop.permute.xlu1 %405 }
 0x312   :  { %v407_v15 = vadd.f32 %v406_v14, %v401_v59 }
 0x314   :  { %411 = vrot.lane.b32.xlu1 %v407_v15, %s1448_s25 }
 0x318   :  { %1030 = vrot.lane.b32.xlu1 %v1016_v18, %s1453_s3 }
 0x31c   :  { %1033 = vrot.lane.b32.xlu1 %v1029_v22, %s1453_s3 }
 0x382   :  { %v409_v33 = vpop.permute.xlu0 %408 }
 0x383   :  { %v410_v34 = vadd.f32 %v409_v33, %v404_v8 }
 0x385   :  { %v414_v35 = vmul.f32 0.001953125, %v410_v34 }
 0x386   :  { %v412_v36 = vpop.permute.xlu1 %411 }
 0x387   :  { %v413_v37 = vadd.f32 %v412_v36, %v407_v15  ;;  %v416_v39 = vmul.f32 %v414_v35, %v414_v35  ;;  %v422_v54 = vrot.slane %v414_v35, %v1709_v52  ;;  %v1315_v36 = vld [vmem:[#allocation9 + $0x88] sm:$0xff]  }
 0x389   :  { %v415_v40 = vmul.f32 0.001953125, %v413_v37  ;;  %v423_v55 = vsub.f32 %v1648_v0, %v422_v54  ;;  %v424_v57 = vsub.f32 %v1650_v6, %v422_v54  ;;  %v425_v58 = vsub.f32 %v1658_v12, %v422_v54  ;;  %v1149_v0 = vld [vmem:[%s1829_s5] ss:$0 sm:$0xff] }
 0x38a   :  { %v1031_v41 = vpop.permute.xlu1 %1030  ;;  %v426_v59 = vsub.f32 %v1663_v16, %v422_v54  ;;  %v1318_v54 = vld [vmem:[#allocation9 + $0xa0] sm:$0xff]  }
 0x38b   :  { %v417_v47 = vsub.f32 %v415_v40, %v416_v39  ;;  %v1703_v48 = vadd.f32 %v1031_v41, %v1016_v18  ;;  %v433_v61 = vmul.f32 %v1148_v56, %v423_v55  ;;  %v434_v62 = vmul.f32 %v1148_v56, %v424_v57  ;;  %v1316_v41 = vld [vmem:[#allocation9 + $0x90] sm:$0xff]   ;;  %v1321_v57 = vld [vmem:[#allocation9 + $0xb8] sm:$0xff]  }
 0x38c   :  { %v435_v63 = vmul.f32 %v1148_v56, %v425_v58  ;;  %v436_v1 = vmul.f32 %v1148_v56, %v426_v59  ;;  %v1320_v56 = vld [vmem:[#allocation9 + $0xb0] sm:$0xff]  }
 0x38d   :  { %v418_v49 = vmax.f32 %v417_v47, 0.0  ;;  %1036 = vrot.lane.b32.xlu1 %v1703_v48, %s1454_s26 }
 0x38e   :  { %v1034_v50 = vpop.permute.xlu1 %1033 }
 0x38f   :  { %v1707_v51 = vadd.f32 %v1034_v50, %v1029_v22  ;;  %v437_v53 = vadd.f32 1e-05, %v418_v49 }
 0x391   :  { %1322 = vrsqrt.f32 %v437_v53  ;;  %1039 = vrot.lane.b32.xlu1 %v1707_v51, %s1454_s26 }
 0x39b   :  { %v1323_v60 = vpop.eup %1322 }
 0x39c   :  { %v442_v2 = vrot.slane %v1323_v60, %v1709_v52 }
 0x39e   :  { %v443_v3 = vmul.f32 %v442_v2, %v433_v61  ;;  %v444_v4 = vmul.f32 %v442_v2, %v434_v62  ;;  %v445_v5 = vmul.f32 %v442_v2, %v435_v63  ;;  %v446_v7 = vmul.f32 %v442_v2, %v436_v1 }
 0x3a0   :  { %v453_v6 = vadd.f32 %v1149_v0, %v443_v3  ;;  %v454_v8 = vadd.f32 %v1149_v0, %v444_v4  ;;  %v455_v12 = vadd.f32 %v1149_v0, %v445_v5  ;;  %v456_v9 = vadd.f32 %v1149_v0, %v446_v7 }
 0x3a2   :  { %v457_v16 = vmax.f32 %v453_v6, 0.0  ;;  %v458_v10 = vmax.f32 %v454_v8, 0.0  ;;  %v459_v11 = vmax.f32 %v455_v12, 0.0  ;;  %v460_v13 = vmax.f32 %v456_v9, 0.0 }
 0x3a4   :  { %v461_v14 = vpack.c.bf16 %v458_v10, %v457_v16  ;;  %v462_v15 = vpack.c.bf16 %v460_v13, %v459_v11 }
 0x3a6   :  { %v472_v17 = vshrl.u32 %v461_v14, 16  ;;  %v475_v18 = vshll.u32 %v461_v14, 16  ;;  %v479_v19 = vshrl.u32 %v462_v15, 16  ;;  %v482_v20 = vshll.u32 %v462_v15, 16  ;;  %748 = vmatprep.mubr.bf16.mxu1 %v461_v14 }
 0x3a8   :  { %v474_v24 = vrot.slane %v472_v17, 7  ;;  %v481_v25 = vrot.slane %v479_v19, 7  ;;  %v497_v26 = vrot.slane %v475_v18, 1  ;;  %v499_v27 = vrot.slane %v482_v20, 1 }
 0x3aa   :  { %v477_v31 = vor.u32 %v475_v18, %v474_v24  ;;  %v484_v33 = vor.u32 %v482_v20, %v481_v25  ;;  %v498_v34 = vor.u32 %v497_v26, %v472_v17  ;;  %v500_v35 = vor.u32 %v499_v27, %v479_v19 }
 0x3ac   :  { %v490_v37 = vsel %vm1726_vm15, %v477_v31, %v489_v23  ;;  %v493_v38 = vsel %vm1726_vm15, %v484_v33, %v492_v28  ;;  %v508_v39 = vsel %vm1731_vm0, %v500_v35, %v507_v29  ;;  %v505_v40 = vsel %vm1731_vm0, %v498_v34, %v504_v30 }
 0x3ad   :  { %491 = vst [vmem:[#allocation3] sm:$0xff] %v490_v37  ;;  %494 = vst [vmem:[#allocation3 + $0x18] sm:$0xff] %v493_v38  ;;  %749 = vmatmul.mubr.bf16.vlgmr.msra.gmra.mrb[0].mxu1 %v490_v37 }
 0x3ae   :  { %509 = vst [vmem:[#allocation3 + $0x28] sm:$0xff] %v508_v39  ;;  %506 = vst [vmem:[#allocation3 + $0x10] sm:$0xff] %v505_v40  ;;  %1231 = vmatpush3.bf16.msra.mxu1 %v1700_v32  ;;  %756 = vmatprep.mubr.bf16.mxu1 %v462_v15  ;;  %v1319_v32 = vld [vmem:[#allocation9 + $0xa8] sm:$0xff]  }
 0x3af   :  { %1232 = vmatprep.subr.bf16.mxu1 %v1315_v36 }
 0x3b2   :  { %1233 = vmatpush3.bf16.msra.mxu1 %v1315_v36 }
 0x3b3   :  { %1234 = vmatprep.subr.bf16.mxu1 %v1316_v41 }
 0x3b5   :  { %v512_v47 = vld [vmem:[#allocation3 + $0x10] sm:$0x80]  ;;  %v515_v49 = vld [vmem:[#allocation3 + $0x28] sm:$0x80]  ;;  %757 = vmatmul.mubr.bf16.gmra.mrb[4].mxu1 %v493_v38 }
 0x3b6   :  { %v513_v50 = vsel %vm511_vm2, 0, %v512_v47  ;;  %v516_v53 = vsel %vm511_vm2, 0, %v515_v49  ;;  %1235 = vmatpush3.bf16.msra.mxu1 %v1316_v41 }
 0x3b7   :  { %514 = vst [vmem:[#allocation3 + $0x10] sm:$0x80] %v513_v50  ;;  %517 = vst [vmem:[#allocation3 + $0x28] sm:$0x80] %v516_v53  ;;  %1236 = vmatprep.subr.bf16.mxu1 %v1317_v44 }
 0x3ba   :  { %1237 = vmatpush3.bf16.msra.mxu1 %v1317_v44 }
 0x3bb   :  { %1238 = vmatprep.subr.bf16.mxu1 %v1318_v54 }
 0x3be   :  { %v520_v55 = vld [vmem:[#allocation3 + $0x10] sm:$0xff]  ;;  %1239 = vmatpush3.bf16.msra.mxu1 %v1318_v54  ;;  %v523_v58 = vld [vmem:[#allocation3 + $0x28] sm:$0xff] }
 0x3bf   :  { %1246 = vmatprep.mubr.bf16.mxu1 %v520_v55  ;;  %1240 = vmatprep.subr.bf16.mxu1 %v1319_v32 }
 0x3c2   :  { %1241 = vmatpush3.bf16.msra.mxu1 %v1319_v32 }
 0x3c3   :  { %1242 = vmatprep.subr.bf16.mxu1 %v1320_v56 }
 0x3c6   :  { %1243 = vmatpush3.bf16.msra.mxu1 %v1320_v56 }
 0x3c7   :  { %1244 = vmatprep.subr.bf16.mxu1 %v1321_v57 }
 0x3ca   :  { %1245 = vmatpush3.bf16.msra.mxu1 %v1321_v57 }
 0x3cd   :  { %1247 = vmatmul.mubr.bf16.vlgmr.msra.gmra.mrb[8].mxu1 %v523_v58 }
 0x3ff   :  { %v1037_v59 = vpop.permute.xlu1 %1036 }
 0x400   :  { %v1038_v60 = vadd.f32 %v1037_v59, %v1703_v48 }
 0x402   :  { %1042 = vrot.lane.b32.xlu1 %v1038_v60, %s1455_s22 }
 0x403   :  { %v1040_v61 = vpop.permute.xlu1 %1039 }
 0x404   :  { %v1041_v62 = vadd.f32 %v1040_v61, %v1707_v51 }
 0x406   :  { %1045 = vrot.lane.b32.xlu1 %v1041_v62, %s1455_s22 }
 0x474   :  { %v1043_v63 = vpop.permute.xlu1 %1042 }
 0x475   :  { %v1749_v1 = vadd.f32 %v1043_v63, %v1038_v60 }
 0x477   :  { %1048 = vrot.lane.b32.xlu1 %v1749_v1, %s1448_s25 }
 0x478   :  { %v1046_v2 = vpop.permute.xlu1 %1045 }
 0x479   :  { %v1753_v0 = vadd.f32 %v1046_v2, %v1041_v62 }
 0x47b   :  { %1051 = vrot.lane.b32.xlu1 %v1753_v0, %s1448_s25 }
 0x480   :  { %v1202_v48 = vpop.f32.mrb[0].mxu1 }
 0x481   :  { %v1203_v3 = vpop.f32.mrb[1].mxu1 }
 0x482   :  { %v1204_v4 = vadd.f32 %v1203_v3, %v1202_v48  ;;  %v1205_v5 = vpop.f32.mrb[2].mxu1 }
 0x483   :  { %v1206_v7 = vpop.f32.mrb[3].mxu1 }
 0x484   :  { %v1207_v51 = vadd.f32 %v1206_v7, %v1205_v5 }
 0x488   :  { %v1208_v6 = vpop.f32.mrb[4].mxu1 }
 0x489   :  { %v1209_v8 = vpop.f32.mrb[5].mxu1 }
 0x48a   :  { %v1210_v12 = vadd.f32 %v1209_v8, %v1208_v6  ;;  %v1211_v9 = vpop.f32.mrb[6].mxu1 }
 0x48b   :  { %v1212_v16 = vpop.f32.mrb[7].mxu1 }
 0x48c   :  { %v1213_v10 = vadd.f32 %v1212_v16, %v1211_v9 }
 0x4a0   :  { %v1248_v11 = vpop.f32.mrb[8].mxu1 }
 0x4a1   :  { %v1757_v13 = vadd.f32 %v1248_v11, %v1210_v12  ;;  %v799_v14 = vpop.f32.mrb[9].mxu1 }
 0x4a2   :  { %v1759_v15 = vadd.f32 %v1204_v4, %v799_v14  ;;  %v1249_v17 = vpop.f32.mrb[10].mxu1 }
 0x4a3   :  { %v1761_v18 = vadd.f32 %v1249_v17, %v1213_v10  ;;  %v802_v19 = vpop.f32.mrb[11].mxu1  ;;  %v827_v24 = vmul.f32 %v1757_v13, %v1757_v13 }
 0x4a4   :  { %v1763_v20 = vadd.f32 %v1207_v51, %v802_v19  ;;  %v825_v21 = vmul.f32 %v1759_v15, %v1759_v15 }
 0x4a5   :  { %v828_v27 = vmul.f32 %v1761_v18, %v1761_v18 }
 0x4a6   :  { %v816_v22 = vadd.f32 %v1763_v20, %v1759_v15  ;;  %v826_v23 = vmul.f32 %v1763_v20, %v1763_v20 }
 0x4a8   :  { %v817_v25 = vadd.f32 %v816_v22, %v1757_v13  ;;  %v829_v26 = vadd.f32 %v826_v23, %v825_v21 }
 0x4aa   :  { %v818_v28 = vadd.f32 %v817_v25, %v1761_v18  ;;  %v830_v29 = vadd.f32 %v829_v26, %v827_v24  ;;  %v1184_v24 = vld [vmem:[%s1832_s8] ss:$0 sm:$0xff] }
 0x4ac   :  { %v819_v30 = vrot.slane %v818_v28, 4  ;;  %v831_v31 = vadd.f32 %v830_v29, %v828_v27 }
 0x4ae   :  { %v820_v33 = vadd.f32 %v819_v30, %v818_v28  ;;  %v832_v34 = vrot.slane %v831_v31, 4 }
 0x4b0   :  { %v821_v35 = vrot.slane %v820_v33, 2  ;;  %v833_v36 = vadd.f32 %v832_v34, %v831_v31  ;;  %v1174_v31 = vld [vmem:[%s1830_s6] ss:$0 sm:$0xff] }
 0x4b2   :  { %v822_v37 = vadd.f32 %v821_v35, %v820_v33  ;;  %v834_v38 = vrot.slane %v833_v36, 2 }
 0x4b4   :  { %v823_v39 = vrot.slane %v822_v37, 1  ;;  %v835_v40 = vadd.f32 %v834_v38, %v833_v36 }
 0x4b6   :  { %v824_v41 = vadd.f32 %v823_v39, %v822_v37  ;;  %v836_v44 = vrot.slane %v835_v40, 1 }
 0x4b8   :  { %838 = vrot.lane.b32.xlu0 %v824_v41, %s1453_s3  ;;  %v837_v47 = vadd.f32 %v836_v44, %v835_v40 }
 0x4bc   :  { %841 = vrot.lane.b32.xlu0 %v837_v47, %s1453_s3 }
 0x4e9   :  { %v1049_v62 = vpop.permute.xlu1 %1048 }
 0x4ea   :  { %v1050_v2 = vadd.f32 %v1049_v62, %v1749_v1 }
 0x4ec   :  { %v1054_v3 = vmul.f32 0.001953125, %v1050_v2 }
 0x4ed   :  { %v1052_v63 = vpop.permute.xlu1 %1051 }
 0x4ee   :  { %v1053_v48 = vadd.f32 %v1052_v63, %v1753_v0  ;;  %v1056_v5 = vmul.f32 %v1054_v3, %v1054_v3  ;;  %v1062_v1 = vrot.slane %v1054_v3, %v1709_v52 }
 0x4f0   :  { %v1055_v4 = vmul.f32 0.001953125, %v1053_v48  ;;  %v1063_v23 = vsub.f32 %v1676_v43, %v1062_v1  ;;  %v1064_v25 = vsub.f32 %v1682_v46, %v1062_v1  ;;  %v1065_v26 = vsub.f32 %v1674_v42, %v1062_v1 }
 0x4f1   :  { %v1066_v27 = vsub.f32 %v1680_v45, %v1062_v1 }
 0x4f2   :  { %v1057_v7 = vsub.f32 %v1055_v4, %v1056_v5  ;;  %v1073_v30 = vmul.f32 %v1184_v24, %v1063_v23  ;;  %v1074_v46 = vmul.f32 %v1184_v24, %v1064_v25  ;;  %v1075_v35 = vmul.f32 %v1184_v24, %v1065_v26 }
 0x4f3   :  { %v1076_v42 = vmul.f32 %v1184_v24, %v1066_v27 }
 0x4f4   :  { %v1058_v51 = vmax.f32 %v1057_v7, 0.0 }
 0x4f6   :  { %v1077_v12 = vadd.f32 1e-05, %v1058_v51 }
 0x4f8   :  { %1324 = vrsqrt.f32 %v1077_v12 }
 0x502   :  { %v1325_v0 = vpop.eup %1324 }
 0x503   :  { %v1082_v28 = vrot.slane %v1325_v0, %v1709_v52 }
 0x505   :  { %v1083_v36 = vmul.f32 %v1082_v28, %v1073_v30  ;;  %v1084_v38 = vmul.f32 %v1082_v28, %v1074_v46  ;;  %v1085_v39 = vmul.f32 %v1082_v28, %v1075_v35 }
 0x52a   :  { %v839_v49 = vpop.permute.xlu0 %838 }
 0x52b   :  { %v840_v50 = vadd.f32 %v839_v49, %v824_v41 }
 0x52d   :  { %844 = vrot.lane.b32.xlu0 %v840_v50, %s1454_s26 }
 0x52e   :  { %v842_v53 = vpop.permute.xlu0 %841 }
 0x52f   :  { %v843_v54 = vadd.f32 %v842_v53, %v837_v47 }
 0x531   :  { %847 = vrot.lane.b32.xlu0 %v843_v54, %s1454_s26 }
 0x59f   :  { %v845_v32 = vpop.permute.xlu0 %844 }
 0x5a0   :  { %v846_v55 = vadd.f32 %v845_v32, %v840_v50 }
 0x5a2   :  { %850 = vrot.lane.b32.xlu0 %v846_v55, %s1455_s22 }
 0x5a3   :  { %v848_v56 = vpop.permute.xlu0 %847 }
 0x5a4   :  { %v849_v57 = vadd.f32 %v848_v56, %v843_v54 }
 0x5a6   :  { %853 = vrot.lane.b32.xlu0 %v849_v57, %s1455_s22 }
 0x614   :  { %v851_v58 = vpop.permute.xlu0 %850 }
 0x615   :  { %v852_v59 = vadd.f32 %v851_v58, %v846_v55 }
 0x617   :  { %856 = vrot.lane.b32.xlu0 %v852_v59, %s1448_s25 }
 0x618   :  { %v854_v60 = vpop.permute.xlu0 %853 }
 0x619   :  { %v855_v61 = vadd.f32 %v854_v60, %v849_v57 }
 0x61b   :  { %859 = vrot.lane.b32.xlu0 %v855_v61, %s1448_s25 }
 0x689   :  { %v857_v6 = vpop.permute.xlu0 %856 }
 0x68a   :  { %v858_v8 = vadd.f32 %v857_v6, %v852_v59 }
 0x68c   :  { %v862_v9 = vmul.f32 0.001953125, %v858_v8 }
 0x68d   :  { %v860_v16 = vpop.permute.xlu0 %859 }
 0x68e   :  { %v861_v10 = vadd.f32 %v860_v16, %v855_v61  ;;  %v864_v11 = vmul.f32 %v862_v9, %v862_v9  ;;  %v870_v22 = vrot.slane %v862_v9, %v1709_v52 }
 0x690   :  { %v863_v14 = vmul.f32 0.001953125, %v861_v10  ;;  %v871_v29 = vsub.f32 %v1759_v15, %v870_v22  ;;  %v872_v43 = vsub.f32 %v1763_v20, %v870_v22  ;;  %v873_v33 = vsub.f32 %v1757_v13, %v870_v22  ;;  %v1185_v13 = vld [vmem:[%s1833_s9] ss:$0 sm:$0xff] }
 0x691   :  { %v874_v34 = vsub.f32 %v1761_v18, %v870_v22  ;;  %v1086_v15 = vmul.f32 %v1082_v28, %v1076_v42  ;;  %v1175_v18 = vld [vmem:[%s1831_s7] ss:$0 sm:$0xff]  ;;  %v1093_v54 = vadd.f32 %v1185_v13, %v1083_v36  ;;  %v1094_v32 = vadd.f32 %v1185_v13, %v1084_v38  ;;  %s1416_s7 = scalar_lea.vmem %s1115_s16, 512 }
 0x692   :  { %v865_v17 = vsub.f32 %v863_v14, %v864_v11  ;;  %v881_v37 = vmul.f32 %v1174_v31, %v871_v29  ;;  %v882_v40 = vmul.f32 %v1174_v31, %v872_v43  ;;  %v883_v41 = vmul.f32 %v1174_v31, %v873_v33  ;;  %p1417_p4 = scmp.ne.s32.totalorder %s1115_s16, %s1416_s7  ;;  %p1422_p6 = scmp.lt.s32.totalorder %s1416_s7, %s1416_s7 }
 0x693   :  { %v884_v44 = vmul.f32 %v1174_v31, %v874_v34  ;;  %v1095_v55 = vadd.f32 %v1185_v13, %v1085_v39  ;;  %v1096_v56 = vadd.f32 %v1185_v13, %v1086_v15 }
 0x694   :  { %v866_v19 = vmax.f32 %v865_v17, 0.0  ;;  %p1423_p7 = por %p1422_p6, %p1421_p5 }
 0x696   :  { %v885_v21 = vadd.f32 1e-05, %v866_v19  ;;  %p1424_p8 = pnand %p1423_p7, %p1417_p4 }
 0x698   :  { %1326 = vrsqrt.f32 %v885_v21 }
 0x6a2   :  { %v1327_v45 = vpop.eup %1326 }
 0x6a3   :  { %v890_v47 = vrot.slane %v1327_v45, %v1709_v52 }
 0x6a5   :  { %v891_v20 = vmul.f32 %v890_v47, %v881_v37  ;;  %v892_v49 = vmul.f32 %v890_v47, %v882_v40  ;;  %v893_v50 = vmul.f32 %v890_v47, %v883_v41  ;;  %v894_v53 = vmul.f32 %v890_v47, %v884_v44 }
 0x6a7   :  { %v901_v57 = vadd.f32 %v1175_v18, %v891_v20  ;;  %v902_v58 = vadd.f32 %v1175_v18, %v892_v49  ;;  %v903_v59 = vadd.f32 %v1175_v18, %v893_v50  ;;  %v904_v52 = vadd.f32 %v1175_v18, %v894_v53 }
 0x6a9   :  { %v1097_v60 = vadd.f32 %v1093_v54, %v901_v57  ;;  %v1098_v61 = vadd.f32 %v1094_v32, %v902_v58  ;;  %v1099_v62 = vadd.f32 %v1095_v55, %v903_v59  ;;  %v1100_v63 = vadd.f32 %v1096_v56, %v904_v52 }
 0x6ab   :  { %v1101_v2 = vmax.f32 %v1097_v60, 0.0  ;;  %v1102_v48 = vmax.f32 %v1098_v61, 0.0  ;;  %v1103_v3 = vmax.f32 %v1099_v62, 0.0  ;;  %v1104_v4 = vmax.f32 %v1100_v63, 0.0 }
 0x6ad   :  { %1105 = vst [vmem:[#allocation12] sm:$0xff] %v1101_v2  ;;  %1106 = vst [vmem:[#allocation12 + $0x8] sm:$0xff] %v1102_v48 }
 0x6ae   :  { %1107 = vst [vmem:[#allocation12 + $0x10] sm:$0xff] %v1103_v3  ;;  %1108 = vst [vmem:[#allocation12 + $0x18] sm:$0xff] %v1104_v4 }
 0x6af   :  { %1427 = shalt.err (!%p1424_p8)
}
 0x6b0   :  { %s1428_s13 = scalar_lea.hbm %s1834_s10, 512 }
 0x6b1   :  { %p1429_p9 = scmp.ne.s32.totalorder %s1834_s10, %s1428_s13  ;;  %p1432_p10 = scmp.lt.u32.totalorder %s1428_s13, %s1834_s10 }
 0x6b3   :  { %p1434_p11 = pnand %p1432_p10, %p1429_p9 }
 0x6b5   :  { %1437 = shalt.err (!%p1434_p11)
}
 0x6b6   :  { %s1457_s14 = smov 128  }
 0x6b7   :  { %1120 = dma.vmem_to_hbm [thread:$0]  %s1115_s16, 512, %s1834_s10, [#allocation6], %s1457_s14, %s1457_s14, %s1453_s3  }
 0x6b8   :  { %1444 = dma.done.wait [#allocation6], 512  }
 0x6b9   :  { %1445 = vsyncadd [#allocation6], 4294966784 }
 0x6ba   :  { %1124 = vsyncpa [#allocation5], 1 }
 0x6bb   :  { %1125 = vsyncpa [#allocation8], 1 }
 0x6bc   :  { %1126 = vsyncpa [#allocation11], 1 }
 0x6bd   :  { %1127 = vsyncpa [#allocation6], 1 }

</bundles_post_ra>
